<compile_context>
chip_gen: v7x
topology: tpu7x:2x2x1
jax: 0.10.0
libtpu: 0.0.40
codegen_flags: <defaults>
</compile_context>

<pallas_src>
import functools

import jax
import jax.numpy as jnp
from jax.experimental import pallas as pl
from jax.experimental.pallas import tpu as pltpu


def _pick_q_tile(seq_len):
    """Largest convenient query tile that divides seq_len (multiple of 8)."""
    if seq_len <= 128:
        return seq_len
    for tq in (128, 64, 32, 16, 8):
        if seq_len % tq == 0:
            return tq
    return seq_len  # fallback: single tile


def _mha_kernel(hs_ref, pos_ref,
                wq_ref, bq_ref, wk_ref, bk_ref,
                wv_ref, bv_ref, wo_ref, bo_ref,
                out_ref,
                k_scr, v_scr,
                *, num_heads, q_tile):
    H = num_heads
    E = hs_ref.shape[2]
    cdt = k_scr.dtype                       # bf16 compute dtype for MXU operands
    qi = pl.program_id(1)

    # ---- K / V projections: once per batch element, carried across all query
    #      tiles in head-major VMEM scratch.  The hs/pos index_maps are constant
    #      in qi, so the (1, T, E) input blocks are not re-DMA'd per tile. ----
    @pl.when(qi == 0)
    def _():
        hs_full = hs_ref[0]                 # (T, E)
        hspos_full = hs_full + pos_ref[0]   # keys use pos-embedded states
        for h in range(H):                  # static loop; per-head weight slabs
            k_scr[h] = (jnp.dot(hspos_full, wk_ref[h],
                                preferred_element_type=jnp.float32)
                        + bk_ref[h]).astype(cdt)
            v_scr[h] = (jnp.dot(hs_full, wv_ref[h],
                                preferred_element_type=jnp.float32)
                        + bv_ref[h]).astype(cdt)

    # ---- Query tile ----
    q0 = pl.multiple_of(qi * q_tile, q_tile)
    hs_q = hs_ref[0, pl.ds(q0, q_tile), :]
    hspos_q = hs_q + pos_ref[0, pl.ds(q0, q_tile), :]

    acc = jnp.zeros((q_tile, E), jnp.float32)
    for h in range(H):
        # head_dim**-0.5 scaling is folded into wq / bq in the wrapper.
        q_h = (jnp.dot(hspos_q, wq_ref[h],
                       preferred_element_type=jnp.float32)
               + bq_ref[h]).astype(cdt)                       # (TQ, Dh)
        s = jnp.einsum("qd,kd->qk", q_h, k_scr[h],
                       preferred_element_type=jnp.float32)    # (TQ, T)
        s = s - jnp.max(s, axis=-1, keepdims=True)
        p = jnp.exp(s)
        p = p * pl.reciprocal(jnp.sum(p, axis=-1, keepdims=True), approx=True)
        ctx = jnp.dot(p.astype(cdt), v_scr[h],
                      preferred_element_type=jnp.float32)     # (TQ, Dh)
        # out_proj split per head and accumulated in f32 (avoids head concat).
        acc = acc + jnp.dot(ctx.astype(cdt), wo_ref[h],
                            preferred_element_type=jnp.float32)  # (TQ, E)

    out_ref[0] = (acc + bo_ref[...]).astype(out_ref.dtype)


def rtdetr_mha_pallas(hidden_states, position_embeddings, params, *, num_heads,
                      compute_dtype=jnp.bfloat16):
    """hidden_states, position_embeddings: (B, T, E)."""
    B, T, E = hidden_states.shape
    H = num_heads
    Dh = E // H
    assert Dh * H == E, "embed_dim must be divisible by num_heads"
    scaling = Dh ** (-0.5)

    wq, bq = params["q_proj"]
    wk, bk = params["k_proj"]
    wv, bv = params["v_proj"]
    wo, bo = params["out_proj"]

    # Host-side (one-time) weight prep: transpose, fold scaling, split heads.
    def split_in_proj(w, b, scale=1.0):
        wt = (w.T * scale).reshape(E, H, Dh).transpose(1, 0, 2)   # (H, E, Dh)
        bt = (b * scale).reshape(H, 1, Dh)                        # (H, 1, Dh)
        return wt.astype(compute_dtype), bt.astype(jnp.float32)

    wq_h, bq_h = split_in_proj(wq, bq, scaling)
    wk_h, bk_h = split_in_proj(wk, bk)
    wv_h, bv_h = split_in_proj(wv, bv)
    wo_h = wo.T.reshape(H, Dh, E).astype(compute_dtype)           # (H, Dh, E)
    bo2 = bo.reshape(1, E).astype(jnp.float32)

    hs = hidden_states.astype(compute_dtype)
    pos = position_embeddings.astype(compute_dtype)

    q_tile = _pick_q_tile(T)
    n_q = T // q_tile

    kernel = functools.partial(_mha_kernel, num_heads=H, q_tile=q_tile)

    seq_spec = pl.BlockSpec((1, T, E), lambda b, qi: (b, 0, 0))
    out_spec = pl.BlockSpec((1, q_tile, E), lambda b, qi: (b, qi, 0))
    # Weight/bias index_maps are constant, so they are DMA'd only once; the
    # default double-buffering of these small blocks wastes <1 MiB, so we skip
    # pl.Buffered(1) for compile robustness.
    w_spec = pl.BlockSpec((H, E, Dh), lambda b, qi: (0, 0, 0))
    b_spec = pl.BlockSpec((H, 1, Dh), lambda b, qi: (0, 0, 0))
    wo_spec = pl.BlockSpec((H, Dh, E), lambda b, qi: (0, 0, 0))
    bo_spec = pl.BlockSpec((1, E), lambda b, qi: (0, 0))

    # Rough VMEM budget (tiles + weights + scratches + transients), clamped to
    # a range that is safe on v5e/v6e/v7x yet above the small default limits.
    c_bytes = jnp.dtype(compute_dtype).itemsize
    o_bytes = jnp.dtype(hidden_states.dtype).itemsize
    lane = 128
    vmem_est = (
        4 * T * E * c_bytes                          # hs + pos blocks (x2 buf)
        + 2 * q_tile * E * o_bytes                   # output block (x2 buf)
        + 2 * 4 * E * E * c_bytes                    # projection weights
        + 2 * H * T * max(Dh, lane) * c_bytes        # K/V scratch (lane-padded)
        + 8 * q_tile * max(T, lane) * 4              # score/prob transients f32
        + 4 * q_tile * E * 4                         # f32 accumulator + slack
    )
    vmem_limit = int(min(max(2 * vmem_est, 32 * 1024 * 1024), 48 * 1024 * 1024))

    return pl.pallas_call(
        kernel,
        out_shape=jax.ShapeDtypeStruct((B, T, E), hidden_states.dtype),
        grid_spec=pltpu.PrefetchScalarGridSpec(
            num_scalar_prefetch=0,
            grid=(B, n_q),
            in_specs=[seq_spec, seq_spec,
                      w_spec, b_spec, w_spec, b_spec, w_spec, b_spec,
                      wo_spec, bo_spec],
            out_specs=out_spec,
            scratch_shapes=[pltpu.VMEM((H, T, Dh), compute_dtype),
                            pltpu.VMEM((H, T, Dh), compute_dtype)],
        ),
        compiler_params=pltpu.CompilerParams(
            dimension_semantics=("parallel", "arbitrary"),
            vmem_limit_bytes=vmem_limit),
    )(hs, pos, wq_h, bq_h, wk_h, bk_h, wv_h, bv_h, wo_h, bo2)


def _reference_mha(hidden_states, position_embeddings, params, *, num_heads):
    """Pure-JAX reference mirroring the PyTorch forward (mask=None, no dropout)."""
    B, T, E = hidden_states.shape
    Dh = E // num_heads
    scaling = Dh ** (-0.5)
    wq, bq = params["q_proj"]
    wk, bk = params["k_proj"]
    wv, bv = params["v_proj"]
    wo, bo = params["out_proj"]

    hs_pos = hidden_states + position_embeddings
    q = (hs_pos @ wq.T + bq) * scaling
    k = hs_pos @ wk.T + bk
    v = hidden_states @ wv.T + bv

    def split(x):  # (B,T,E) -> (B,H,T,Dh)
        return x.reshape(B, T, num_heads, Dh).transpose(0, 2, 1, 3)

    q, k, v = split(q), split(k), split(v)
    s = jnp.einsum("bhtd,bhsd->bhts", q, k)
    p = jax.nn.softmax(s, axis=-1)
    o = jnp.einsum("bhts,bhsd->bhtd", p, v)
    o = o.transpose(0, 2, 1, 3).reshape(B, T, E)
    return o @ wo.T + bo


if __name__ == "__main__":
    B, E, H = 2, 32, 4

    key = jax.random.PRNGKey(0)
    keys = jax.random.split(key, 10)

    def linear_params(kw, kb, fan_in):
        bound = 1.0 / (fan_in ** 0.5)
        w = jax.random.uniform(kw, (E, E), jnp.float32, -bound, bound)
        b = jax.random.uniform(kb, (E,), jnp.float32, -bound, bound)
        return w, b

    params = {
        "q_proj": linear_params(keys[0], keys[1], E),
        "k_proj": linear_params(keys[2], keys[3], E),
        "v_proj": linear_params(keys[4], keys[5], E),
        "out_proj": linear_params(keys[6], keys[7], E),
    }

    # Case 1: tiny sequence (single query tile).
    T = 8
    hidden_states = jax.random.normal(keys[8], (B, T, E), jnp.float32)
    position_embeddings = jax.random.normal(keys[9], (B, T, E), jnp.float32)
    out = rtdetr_mha_pallas(hidden_states, position_embeddings, params,
                            num_heads=H)
    out = jax.block_until_ready(out)
    ref = _reference_mha(hidden_states, position_embeddings, params,
                         num_heads=H)
    assert out.shape == (B, T, E)
    assert jnp.allclose(out, ref, atol=3e-2, rtol=3e-2), "mismatch vs reference (T=8)"

    # Case 2: exercises the query-tile axis (T=256 -> 2 tiles of 128).
    T2 = 256
    k2a, k2b = jax.random.split(keys[8])
    hs2 = jax.random.normal(k2a, (B, T2, E), jnp.float32)
    pos2 = jax.random.normal(k2b, (B, T2, E), jnp.float32)
    out2 = jax.block_until_ready(
        rtdetr_mha_pallas(hs2, pos2, params, num_heads=H))
    ref2 = _reference_mha(hs2, pos2, params, num_heads=H)
    assert jnp.allclose(out2, ref2, atol=3e-2, rtol=3e-2), "mismatch vs reference (T=256)"

    print("KERNEL_OK")
</pallas_src>

<mosaic_0001>
module attributes {stable_mosaic.version = 11 : i64} {
  func.func @_mha_kernel(%arg0: i32, %arg1: i32, %arg2: memref<1x8x32xbf16, #tpu.memory_space<vmem>>, %arg3: memref<1x8x32xbf16, #tpu.memory_space<vmem>>, %arg4: memref<4x32x8xbf16, #tpu.memory_space<vmem>>, %arg5: memref<4x1x8xf32, #tpu.memory_space<vmem>>, %arg6: memref<4x32x8xbf16, #tpu.memory_space<vmem>>, %arg7: memref<4x1x8xf32, #tpu.memory_space<vmem>>, %arg8: memref<4x32x8xbf16, #tpu.memory_space<vmem>>, %arg9: memref<4x1x8xf32, #tpu.memory_space<vmem>>, %arg10: memref<4x8x32xbf16, #tpu.memory_space<vmem>>, %arg11: memref<1x32xf32, #tpu.memory_space<vmem>>, %arg12: memref<1x8x32xf32, #tpu.memory_space<vmem>>, %arg13: memref<4x8x8xbf16, #tpu.memory_space<vmem>>, %arg14: memref<4x8x8xbf16, #tpu.memory_space<vmem>>) attributes {dimension_semantics = [#tpu.dimension_semantics<parallel>, #tpu.dimension_semantics<arbitrary>], iteration_bounds = array<i64: 2, 1>, scalar_prefetch = 0 : i64, scratch_operands = 2 : i64, tpu.core_type = #tpu.core_type<tc>, window_params = [{transform_indices = @transform_0, window_bounds = array<i64: 1, 8, 32>}, {transform_indices = @transform_1, window_bounds = array<i64: 1, 8, 32>}, {pipeline_mode = #tpu.pipeline_mode<synchronous>, transform_indices = @transform_2, window_bounds = array<i64: 4, 32, 8>}, {pipeline_mode = #tpu.pipeline_mode<synchronous>, transform_indices = @transform_3, window_bounds = array<i64: 4, 1, 8>}, {pipeline_mode = #tpu.pipeline_mode<synchronous>, transform_indices = @transform_4, window_bounds = array<i64: 4, 32, 8>}, {pipeline_mode = #tpu.pipeline_mode<synchronous>, transform_indices = @transform_5, window_bounds = array<i64: 4, 1, 8>}, {pipeline_mode = #tpu.pipeline_mode<synchronous>, transform_indices = @transform_6, window_bounds = array<i64: 4, 32, 8>}, {pipeline_mode = #tpu.pipeline_mode<synchronous>, transform_indices = @transform_7, window_bounds = array<i64: 4, 1, 8>}, {pipeline_mode = #tpu.pipeline_mode<synchronous>, transform_indices = @transform_8, window_bounds = array<i64: 4, 8, 32>}, {pipeline_mode = #tpu.pipeline_mode<synchronous>, transform_indices = @transform_9, window_bounds = array<i64: 1, 32>}, {transform_indices = @transform_10, window_bounds = array<i64: 1, 8, 32>}]} {
    %c0_i32 = arith.constant 0 : i32
    %0 = arith.cmpi eq, %arg1, %c0_i32 : i32
    %1 = arith.extui %0 : i1 to i32
    %c0_i32_0 = arith.constant 0 : i32
    %2 = arith.cmpi ne, %1, %c0_i32_0 : i32
    scf.if %2 {
      %c0_90 = arith.constant 0 : index
      %c0_91 = arith.constant 0 : index
      %c0_92 = arith.constant 0 : index
      %139 = vector.load %arg2[%c0_90, %c0_91, %c0_92] : memref<1x8x32xbf16, #tpu.memory_space<vmem>>, vector<1x8x32xbf16>
      %140 = vector.shape_cast %139 : vector<1x8x32xbf16> to vector<8x32xbf16>
      %c0_93 = arith.constant 0 : index
      %c0_94 = arith.constant 0 : index
      %c0_95 = arith.constant 0 : index
      %141 = vector.load %arg3[%c0_93, %c0_94, %c0_95] : memref<1x8x32xbf16, #tpu.memory_space<vmem>>, vector<1x8x32xbf16>
      %142 = vector.shape_cast %141 : vector<1x8x32xbf16> to vector<8x32xbf16>
      %143 = arith.addf %140, %142 : vector<8x32xbf16>
      %c0_96 = arith.constant 0 : index
      %c0_97 = arith.constant 0 : index
      %c0_98 = arith.constant 0 : index
      %144 = vector.load %arg6[%c0_96, %c0_97, %c0_98] : memref<4x32x8xbf16, #tpu.memory_space<vmem>>, vector<1x32x8xbf16>
      %145 = vector.shape_cast %144 : vector<1x32x8xbf16> to vector<32x8xbf16>
      %cst_99 = arith.constant dense<0.000000e+00> : vector<8x8xf32>
      %146 = tpu.matmul %143, %145, %cst_99 {dimension_numbers = #tpu.dot_dimension_numbers<[1], [0], [0], [1], [0, 0, 1, 1], [], []>} : vector<8x32xbf16>, vector<32x8xbf16>, vector<8x8xf32> -> vector<8x8xf32>
      %c0_100 = arith.constant 0 : index
      %c0_101 = arith.constant 0 : index
      %c0_102 = arith.constant 0 : index
      %147 = vector.load %arg7[%c0_100, %c0_101, %c0_102] : memref<4x1x8xf32, #tpu.memory_space<vmem>>, vector<1x1x8xf32>
      %148 = vector.shape_cast %147 : vector<1x1x8xf32> to vector<1x8xf32>
      %149 = vector.broadcast %148 : vector<1x8xf32> to vector<8x8xf32>
      %150 = arith.addf %146, %149 : vector<8x8xf32>
      %151 = arith.truncf %150 : vector<8x8xf32> to vector<8x8xbf16>
      %c0_103 = arith.constant 0 : index
      %c0_104 = arith.constant 0 : index
      %c0_105 = arith.constant 0 : index
      %152 = vector.load %arg13[%c0_103, %c0_104, %c0_105] : memref<4x8x8xbf16, #tpu.memory_space<vmem>>, vector<1x8x8xbf16>
      %153 = vector.shape_cast %152 : vector<1x8x8xbf16> to vector<8x8xbf16>
      %154 = vector.shape_cast %151 : vector<8x8xbf16> to vector<1x8x8xbf16>
      tpu.vector_store %arg13[%c0_103, %c0_104, %c0_105], %154 {strides = array<i32>} : memref<4x8x8xbf16, #tpu.memory_space<vmem>>, vector<1x8x8xbf16>,
      %c0_106 = arith.constant 0 : index
      %c0_107 = arith.constant 0 : index
      %c0_108 = arith.constant 0 : index
      %155 = vector.load %arg8[%c0_106, %c0_107, %c0_108] : memref<4x32x8xbf16, #tpu.memory_space<vmem>>, vector<1x32x8xbf16>
      %156 = vector.shape_cast %155 : vector<1x32x8xbf16> to vector<32x8xbf16>
      %cst_109 = arith.constant dense<0.000000e+00> : vector<8x8xf32>
      %157 = tpu.matmul %140, %156, %cst_109 {dimension_numbers = #tpu.dot_dimension_numbers<[1], [0], [0], [1], [0, 0, 1, 1], [], []>} : vector<8x32xbf16>, vector<32x8xbf16>, vector<8x8xf32> -> vector<8x8xf32>
      %c0_110 = arith.constant 0 : index
      %c0_111 = arith.constant 0 : index
      %c0_112 = arith.constant 0 : index
      %158 = vector.load %arg9[%c0_110, %c0_111, %c0_112] : memref<4x1x8xf32, #tpu.memory_space<vmem>>, vector<1x1x8xf32>
      %159 = vector.shape_cast %158 : vector<1x1x8xf32> to vector<1x8xf32>
      %160 = vector.broadcast %159 : vector<1x8xf32> to vector<8x8xf32>
      %161 = arith.addf %157, %160 : vector<8x8xf32>
      %162 = arith.truncf %161 : vector<8x8xf32> to vector<8x8xbf16>
      %c0_113 = arith.constant 0 : index
      %c0_114 = arith.constant 0 : index
      %c0_115 = arith.constant 0 : index
      %163 = vector.load %arg14[%c0_113, %c0_114, %c0_115] : memref<4x8x8xbf16, #tpu.memory_space<vmem>>, vector<1x8x8xbf16>
      %164 = vector.shape_cast %163 : vector<1x8x8xbf16> to vector<8x8xbf16>
      %165 = vector.shape_cast %162 : vector<8x8xbf16> to vector<1x8x8xbf16>
      tpu.vector_store %arg14[%c0_113, %c0_114, %c0_115], %165 {strides = array<i32>} : memref<4x8x8xbf16, #tpu.memory_space<vmem>>, vector<1x8x8xbf16>,
      %c1_116 = arith.constant 1 : index
      %c0_117 = arith.constant 0 : index
      %c0_118 = arith.constant 0 : index
      %166 = vector.load %arg6[%c1_116, %c0_117, %c0_118] : memref<4x32x8xbf16, #tpu.memory_space<vmem>>, vector<1x32x8xbf16>
      %167 = vector.shape_cast %166 : vector<1x32x8xbf16> to vector<32x8xbf16>
      %cst_119 = arith.constant dense<0.000000e+00> : vector<8x8xf32>
      %168 = tpu.matmul %143, %167, %cst_119 {dimension_numbers = #tpu.dot_dimension_numbers<[1], [0], [0], [1], [0, 0, 1, 1], [], []>} : vector<8x32xbf16>, vector<32x8xbf16>, vector<8x8xf32> -> vector<8x8xf32>
      %c1_120 = arith.constant 1 : index
      %c0_121 = arith.constant 0 : index
      %c0_122 = arith.constant 0 : index
      %169 = vector.load %arg7[%c1_120, %c0_121, %c0_122] : memref<4x1x8xf32, #tpu.memory_space<vmem>>, vector<1x1x8xf32>
      %170 = vector.shape_cast %169 : vector<1x1x8xf32> to vector<1x8xf32>
      %171 = vector.broadcast %170 : vector<1x8xf32> to vector<8x8xf32>
      %172 = arith.addf %168, %171 : vector<8x8xf32>
      %173 = arith.truncf %172 : vector<8x8xf32> to vector<8x8xbf16>
      %c1_123 = arith.constant 1 : index
      %c0_124 = arith.constant 0 : index
      %c0_125 = arith.constant 0 : index
      %174 = vector.load %arg13[%c1_123, %c0_124, %c0_125] : memref<4x8x8xbf16, #tpu.memory_space<vmem>>, vector<1x8x8xbf16>
      %175 = vector.shape_cast %174 : vector<1x8x8xbf16> to vector<8x8xbf16>
      %176 = vector.shape_cast %173 : vector<8x8xbf16> to vector<1x8x8xbf16>
      tpu.vector_store %arg13[%c1_123, %c0_124, %c0_125], %176 {strides = array<i32>} : memref<4x8x8xbf16, #tpu.memory_space<vmem>>, vector<1x8x8xbf16>,
      %c1_126 = arith.constant 1 : index
      %c0_127 = arith.constant 0 : index
      %c0_128 = arith.constant 0 : index
      %177 = vector.load %arg8[%c1_126, %c0_127, %c0_128] : memref<4x32x8xbf16, #tpu.memory_space<vmem>>, vector<1x32x8xbf16>
      %178 = vector.shape_cast %177 : vector<1x32x8xbf16> to vector<32x8xbf16>
      %cst_129 = arith.constant dense<0.000000e+00> : vector<8x8xf32>
      %179 = tpu.matmul %140, %178, %cst_129 {dimension_numbers = #tpu.dot_dimension_numbers<[1], [0], [0], [1], [0, 0, 1, 1], [], []>} : vector<8x32xbf16>, vector<32x8xbf16>, vector<8x8xf32> -> vector<8x8xf32>
      %c1_130 = arith.constant 1 : index
      %c0_131 = arith.constant 0 : index
      %c0_132 = arith.constant 0 : index
      %180 = vector.load %arg9[%c1_130, %c0_131, %c0_132] : memref<4x1x8xf32, #tpu.memory_space<vmem>>, vector<1x1x8xf32>
      %181 = vector.shape_cast %180 : vector<1x1x8xf32> to vector<1x8xf32>
      %182 = vector.broadcast %181 : vector<1x8xf32> to vector<8x8xf32>
      %183 = arith.addf %179, %182 : vector<8x8xf32>
      %184 = arith.truncf %183 : vector<8x8xf32> to vector<8x8xbf16>
      %c1_133 = arith.constant 1 : index
      %c0_134 = arith.constant 0 : index
      %c0_135 = arith.constant 0 : index
      %185 = vector.load %arg14[%c1_133, %c0_134, %c0_135] : memref<4x8x8xbf16, #tpu.memory_space<vmem>>, vector<1x8x8xbf16>
      %186 = vector.shape_cast %185 : vector<1x8x8xbf16> to vector<8x8xbf16>
      %187 = vector.shape_cast %184 : vector<8x8xbf16> to vector<1x8x8xbf16>
      tpu.vector_store %arg14[%c1_133, %c0_134, %c0_135], %187 {strides = array<i32>} : memref<4x8x8xbf16, #tpu.memory_space<vmem>>, vector<1x8x8xbf16>,
      %c2_136 = arith.constant 2 : index
      %c0_137 = arith.constant 0 : index
      %c0_138 = arith.constant 0 : index
      %188 = vector.load %arg6[%c2_136, %c0_137, %c0_138] : memref<4x32x8xbf16, #tpu.memory_space<vmem>>, vector<1x32x8xbf16>
      %189 = vector.shape_cast %188 : vector<1x32x8xbf16> to vector<32x8xbf16>
      %cst_139 = arith.constant dense<0.000000e+00> : vector<8x8xf32>
      %190 = tpu.matmul %143, %189, %cst_139 {dimension_numbers = #tpu.dot_dimension_numbers<[1], [0], [0], [1], [0, 0, 1, 1], [], []>} : vector<8x32xbf16>, vector<32x8xbf16>, vector<8x8xf32> -> vector<8x8xf32>
      %c2_140 = arith.constant 2 : index
      %c0_141 = arith.constant 0 : index
      %c0_142 = arith.constant 0 : index
      %191 = vector.load %arg7[%c2_140, %c0_141, %c0_142] : memref<4x1x8xf32, #tpu.memory_space<vmem>>, vector<1x1x8xf32>
      %192 = vector.shape_cast %191 : vector<1x1x8xf32> to vector<1x8xf32>
      %193 = vector.broadcast %192 : vector<1x8xf32> to vector<8x8xf32>
      %194 = arith.addf %190, %193 : vector<8x8xf32>
      %195 = arith.truncf %194 : vector<8x8xf32> to vector<8x8xbf16>
      %c2_143 = arith.constant 2 : index
      %c0_144 = arith.constant 0 : index
      %c0_145 = arith.constant 0 : index
      %196 = vector.load %arg13[%c2_143, %c0_144, %c0_145] : memref<4x8x8xbf16, #tpu.memory_space<vmem>>, vector<1x8x8xbf16>
      %197 = vector.shape_cast %196 : vector<1x8x8xbf16> to vector<8x8xbf16>
      %198 = vector.shape_cast %195 : vector<8x8xbf16> to vector<1x8x8xbf16>
      tpu.vector_store %arg13[%c2_143, %c0_144, %c0_145], %198 {strides = array<i32>} : memref<4x8x8xbf16, #tpu.memory_space<vmem>>, vector<1x8x8xbf16>,
      %c2_146 = arith.constant 2 : index
      %c0_147 = arith.constant 0 : index
      %c0_148 = arith.constant 0 : index
      %199 = vector.load %arg8[%c2_146, %c0_147, %c0_148] : memref<4x32x8xbf16, #tpu.memory_space<vmem>>, vector<1x32x8xbf16>
      %200 = vector.shape_cast %199 : vector<1x32x8xbf16> to vector<32x8xbf16>
      %cst_149 = arith.constant dense<0.000000e+00> : vector<8x8xf32>
      %201 = tpu.matmul %140, %200, %cst_149 {dimension_numbers = #tpu.dot_dimension_numbers<[1], [0], [0], [1], [0, 0, 1, 1], [], []>} : vector<8x32xbf16>, vector<32x8xbf16>, vector<8x8xf32> -> vector<8x8xf32>
      %c2_150 = arith.constant 2 : index
      %c0_151 = arith.constant 0 : index
      %c0_152 = arith.constant 0 : index
      %202 = vector.load %arg9[%c2_150, %c0_151, %c0_152] : memref<4x1x8xf32, #tpu.memory_space<vmem>>, vector<1x1x8xf32>
      %203 = vector.shape_cast %202 : vector<1x1x8xf32> to vector<1x8xf32>
      %204 = vector.broadcast %203 : vector<1x8xf32> to vector<8x8xf32>
      %205 = arith.addf %201, %204 : vector<8x8xf32>
      %206 = arith.truncf %205 : vector<8x8xf32> to vector<8x8xbf16>
      %c2_153 = arith.constant 2 : index
      %c0_154 = arith.constant 0 : index
      %c0_155 = arith.constant 0 : index
      %207 = vector.load %arg14[%c2_153, %c0_154, %c0_155] : memref<4x8x8xbf16, #tpu.memory_space<vmem>>, vector<1x8x8xbf16>
      %208 = vector.shape_cast %207 : vector<1x8x8xbf16> to vector<8x8xbf16>
      %209 = vector.shape_cast %206 : vector<8x8xbf16> to vector<1x8x8xbf16>
      tpu.vector_store %arg14[%c2_153, %c0_154, %c0_155], %209 {strides = array<i32>} : memref<4x8x8xbf16, #tpu.memory_space<vmem>>, vector<1x8x8xbf16>,
      %c3_156 = arith.constant 3 : index
      %c0_157 = arith.constant 0 : index
      %c0_158 = arith.constant 0 : index
      %210 = vector.load %arg6[%c3_156, %c0_157, %c0_158] : memref<4x32x8xbf16, #tpu.memory_space<vmem>>, vector<1x32x8xbf16>
      %211 = vector.shape_cast %210 : vector<1x32x8xbf16> to vector<32x8xbf16>
      %cst_159 = arith.constant dense<0.000000e+00> : vector<8x8xf32>
      %212 = tpu.matmul %143, %211, %cst_159 {dimension_numbers = #tpu.dot_dimension_numbers<[1], [0], [0], [1], [0, 0, 1, 1], [], []>} : vector<8x32xbf16>, vector<32x8xbf16>, vector<8x8xf32> -> vector<8x8xf32>
      %c3_160 = arith.constant 3 : index
      %c0_161 = arith.constant 0 : index
      %c0_162 = arith.constant 0 : index
      %213 = vector.load %arg7[%c3_160, %c0_161, %c0_162] : memref<4x1x8xf32, #tpu.memory_space<vmem>>, vector<1x1x8xf32>
      %214 = vector.shape_cast %213 : vector<1x1x8xf32> to vector<1x8xf32>
      %215 = vector.broadcast %214 : vector<1x8xf32> to vector<8x8xf32>
      %216 = arith.addf %212, %215 : vector<8x8xf32>
      %217 = arith.truncf %216 : vector<8x8xf32> to vector<8x8xbf16>
      %c3_163 = arith.constant 3 : index
      %c0_164 = arith.constant 0 : index
      %c0_165 = arith.constant 0 : index
      %218 = vector.load %arg13[%c3_163, %c0_164, %c0_165] : memref<4x8x8xbf16, #tpu.memory_space<vmem>>, vector<1x8x8xbf16>
      %219 = vector.shape_cast %218 : vector<1x8x8xbf16> to vector<8x8xbf16>
      %220 = vector.shape_cast %217 : vector<8x8xbf16> to vector<1x8x8xbf16>
      tpu.vector_store %arg13[%c3_163, %c0_164, %c0_165], %220 {strides = array<i32>} : memref<4x8x8xbf16, #tpu.memory_space<vmem>>, vector<1x8x8xbf16>,
      %c3_166 = arith.constant 3 : index
      %c0_167 = arith.constant 0 : index
      %c0_168 = arith.constant 0 : index
      %221 = vector.load %arg8[%c3_166, %c0_167, %c0_168] : memref<4x32x8xbf16, #tpu.memory_space<vmem>>, vector<1x32x8xbf16>
      %222 = vector.shape_cast %221 : vector<1x32x8xbf16> to vector<32x8xbf16>
      %cst_169 = arith.constant dense<0.000000e+00> : vector<8x8xf32>
      %223 = tpu.matmul %140, %222, %cst_169 {dimension_numbers = #tpu.dot_dimension_numbers<[1], [0], [0], [1], [0, 0, 1, 1], [], []>} : vector<8x32xbf16>, vector<32x8xbf16>, vector<8x8xf32> -> vector<8x8xf32>
      %c3_170 = arith.constant 3 : index
      %c0_171 = arith.constant 0 : index
      %c0_172 = arith.constant 0 : index
      %224 = vector.load %arg9[%c3_170, %c0_171, %c0_172] : memref<4x1x8xf32, #tpu.memory_space<vmem>>, vector<1x1x8xf32>
      %225 = vector.shape_cast %224 : vector<1x1x8xf32> to vector<1x8xf32>
      %226 = vector.broadcast %225 : vector<1x8xf32> to vector<8x8xf32>
      %227 = arith.addf %223, %226 : vector<8x8xf32>
      %228 = arith.truncf %227 : vector<8x8xf32> to vector<8x8xbf16>
      %c3_173 = arith.constant 3 : index
      %c0_174 = arith.constant 0 : index
      %c0_175 = arith.constant 0 : index
      %229 = vector.load %arg14[%c3_173, %c0_174, %c0_175] : memref<4x8x8xbf16, #tpu.memory_space<vmem>>, vector<1x8x8xbf16>
      %230 = vector.shape_cast %229 : vector<1x8x8xbf16> to vector<8x8xbf16>
      %231 = vector.shape_cast %228 : vector<8x8xbf16> to vector<1x8x8xbf16>
      tpu.vector_store %arg14[%c3_173, %c0_174, %c0_175], %231 {strides = array<i32>} : memref<4x8x8xbf16, #tpu.memory_space<vmem>>, vector<1x8x8xbf16>,
    } else {
    }
    %c8_i32 = arith.constant 8 : i32
    %3 = arith.muli %arg1, %c8_i32 : i32
    %4 = tpu.assume_multiple %3, 8 : i32
    %c0 = arith.constant 0 : index
    %5 = arith.index_cast %4 : i32 to index
    %c0_1 = arith.constant 0 : index
    %6 = vector.load %arg2[%c0, %5, %c0_1] : memref<1x8x32xbf16, #tpu.memory_space<vmem>>, vector<1x8x32xbf16>
    %7 = vector.shape_cast %6 : vector<1x8x32xbf16> to vector<8x32xbf16>
    %c0_2 = arith.constant 0 : index
    %8 = arith.index_cast %4 : i32 to index
    %c0_3 = arith.constant 0 : index
    %9 = vector.load %arg3[%c0_2, %8, %c0_3] : memref<1x8x32xbf16, #tpu.memory_space<vmem>>, vector<1x8x32xbf16>
    %10 = vector.shape_cast %9 : vector<1x8x32xbf16> to vector<8x32xbf16>
    %11 = arith.addf %7, %10 : vector<8x32xbf16>
    %cst = arith.constant 0.000000e+00 : f32
    %12 = vector.broadcast %cst : f32 to vector<8x32xf32>
    %c0_4 = arith.constant 0 : index
    %c0_5 = arith.constant 0 : index
    %c0_6 = arith.constant 0 : index
    %13 = vector.load %arg4[%c0_4, %c0_5, %c0_6] : memref<4x32x8xbf16, #tpu.memory_space<vmem>>, vector<1x32x8xbf16>
    %14 = vector.shape_cast %13 : vector<1x32x8xbf16> to vector<32x8xbf16>
    %cst_7 = arith.constant dense<0.000000e+00> : vector<8x8xf32>
    %15 = tpu.matmul %11, %14, %cst_7 {dimension_numbers = #tpu.dot_dimension_numbers<[1], [0], [0], [1], [0, 0, 1, 1], [], []>} : vector<8x32xbf16>, vector<32x8xbf16>, vector<8x8xf32> -> vector<8x8xf32>
    %c0_8 = arith.constant 0 : index
    %c0_9 = arith.constant 0 : index
    %c0_10 = arith.constant 0 : index
    %16 = vector.load %arg5[%c0_8, %c0_9, %c0_10] : memref<4x1x8xf32, #tpu.memory_space<vmem>>, vector<1x1x8xf32>
    %17 = vector.shape_cast %16 : vector<1x1x8xf32> to vector<1x8xf32>
    %18 = vector.broadcast %17 : vector<1x8xf32> to vector<8x8xf32>
    %19 = arith.addf %15, %18 : vector<8x8xf32>
    %20 = arith.truncf %19 : vector<8x8xf32> to vector<8x8xbf16>
    %c0_11 = arith.constant 0 : index
    %c0_12 = arith.constant 0 : index
    %c0_13 = arith.constant 0 : index
    %21 = vector.load %arg13[%c0_11, %c0_12, %c0_13] : memref<4x8x8xbf16, #tpu.memory_space<vmem>>, vector<1x8x8xbf16>
    %22 = vector.shape_cast %21 : vector<1x8x8xbf16> to vector<8x8xbf16>
    "tpu.trace_start"() <{level = 10 : i32, message = "qd,kd->qk"}> : () -> ()
    %cst_14 = arith.constant dense<0.000000e+00> : vector<8x8xf32>
    %23 = tpu.matmul %20, %22, %cst_14 {dimension_numbers = #tpu.dot_dimension_numbers<[1], [1], [0], [0], [0, 0, 1, 0], [], []>} : vector<8x8xbf16>, vector<8x8xbf16>, vector<8x8xf32> -> vector<8x8xf32>
    "tpu.trace_stop"() : () -> ()
    %cst_15 = arith.constant dense<0xFF800000> : vector<8xf32>
    %24 = vector.multi_reduction <maximumf>, %23, %cst_15 [1] : vector<8x8xf32> to vector<8xf32>
    %25 = vector.shape_cast %24 : vector<8xf32> to vector<8x1xf32>
    %26 = vector.broadcast %25 : vector<8x1xf32> to vector<8x8xf32>
    %27 = arith.subf %23, %26 : vector<8x8xf32>
    %28 = math.exp %27 : vector<8x8xf32>
    %cst_16 = arith.constant dense<0.000000e+00> : vector<8xf32>
    %29 = vector.multi_reduction <add>, %28, %cst_16 [1] : vector<8x8xf32> to vector<8xf32>
    %30 = vector.shape_cast %29 : vector<8xf32> to vector<8x1xf32>
    %31 = tpu.reciprocal %30 {approx = true} : vector<8x1xf32> -> vector<8x1xf32>
    %32 = vector.broadcast %31 : vector<8x1xf32> to vector<8x8xf32>
    %33 = arith.mulf %28, %32 : vector<8x8xf32>
    %34 = arith.truncf %33 : vector<8x8xf32> to vector<8x8xbf16>
    %c0_17 = arith.constant 0 : index
    %c0_18 = arith.constant 0 : index
    %c0_19 = arith.constant 0 : index
    %35 = vector.load %arg14[%c0_17, %c0_18, %c0_19] : memref<4x8x8xbf16, #tpu.memory_space<vmem>>, vector<1x8x8xbf16>
    %36 = vector.shape_cast %35 : vector<1x8x8xbf16> to vector<8x8xbf16>
    %cst_20 = arith.constant dense<0.000000e+00> : vector<8x8xf32>
    %37 = tpu.matmul %34, %36, %cst_20 {dimension_numbers = #tpu.dot_dimension_numbers<[1], [0], [0], [1], [0, 0, 1, 1], [], []>} : vector<8x8xbf16>, vector<8x8xbf16>, vector<8x8xf32> -> vector<8x8xf32>
    %38 = arith.truncf %37 : vector<8x8xf32> to vector<8x8xbf16>
    %c0_21 = arith.constant 0 : index
    %c0_22 = arith.constant 0 : index
    %c0_23 = arith.constant 0 : index
    %39 = vector.load %arg10[%c0_21, %c0_22, %c0_23] : memref<4x8x32xbf16, #tpu.memory_space<vmem>>, vector<1x8x32xbf16>
    %40 = vector.shape_cast %39 : vector<1x8x32xbf16> to vector<8x32xbf16>
    %cst_24 = arith.constant dense<0.000000e+00> : vector<8x32xf32>
    %41 = tpu.matmul %38, %40, %cst_24 {dimension_numbers = #tpu.dot_dimension_numbers<[1], [0], [0], [1], [0, 0, 1, 1], [], []>} : vector<8x8xbf16>, vector<8x32xbf16>, vector<8x32xf32> -> vector<8x32xf32>
    %42 = arith.addf %12, %41 : vector<8x32xf32>
    %c1 = arith.constant 1 : index
    %c0_25 = arith.constant 0 : index
    %c0_26 = arith.constant 0 : index
    %43 = vector.load %arg4[%c1, %c0_25, %c0_26] : memref<4x32x8xbf16, #tpu.memory_space<vmem>>, vector<1x32x8xbf16>
    %44 = vector.shape_cast %43 : vector<1x32x8xbf16> to vector<32x8xbf16>
    %cst_27 = arith.constant dense<0.000000e+00> : vector<8x8xf32>
    %45 = tpu.matmul %11, %44, %cst_27 {dimension_numbers = #tpu.dot_dimension_numbers<[1], [0], [0], [1], [0, 0, 1, 1], [], []>} : vector<8x32xbf16>, vector<32x8xbf16>, vector<8x8xf32> -> vector<8x8xf32>
    %c1_28 = arith.constant 1 : index
    %c0_29 = arith.constant 0 : index
    %c0_30 = arith.constant 0 : index
    %46 = vector.load %arg5[%c1_28, %c0_29, %c0_30] : memref<4x1x8xf32, #tpu.memory_space<vmem>>, vector<1x1x8xf32>
    %47 = vector.shape_cast %46 : vector<1x1x8xf32> to vector<1x8xf32>
    %48 = vector.broadcast %47 : vector<1x8xf32> to vector<8x8xf32>
    %49 = arith.addf %45, %48 : vector<8x8xf32>
    %50 = arith.truncf %49 : vector<8x8xf32> to vector<8x8xbf16>
    %c1_31 = arith.constant 1 : index
    %c0_32 = arith.constant 0 : index
    %c0_33 = arith.constant 0 : index
    %51 = vector.load %arg13[%c1_31, %c0_32, %c0_33] : memref<4x8x8xbf16, #tpu.memory_space<vmem>>, vector<1x8x8xbf16>
    %52 = vector.shape_cast %51 : vector<1x8x8xbf16> to vector<8x8xbf16>
    "tpu.trace_start"() <{level = 10 : i32, message = "qd,kd->qk"}> : () -> ()
    %cst_34 = arith.constant dense<0.000000e+00> : vector<8x8xf32>
    %53 = tpu.matmul %50, %52, %cst_34 {dimension_numbers = #tpu.dot_dimension_numbers<[1], [1], [0], [0], [0, 0, 1, 0], [], []>} : vector<8x8xbf16>, vector<8x8xbf16>, vector<8x8xf32> -> vector<8x8xf32>
    "tpu.trace_stop"() : () -> ()
    %cst_35 = arith.constant dense<0xFF800000> : vector<8xf32>
    %54 = vector.multi_reduction <maximumf>, %53, %cst_35 [1] : vector<8x8xf32> to vector<8xf32>
    %55 = vector.shape_cast %54 : vector<8xf32> to vector<8x1xf32>
    %56 = vector.broadcast %55 : vector<8x1xf32> to vector<8x8xf32>
    %57 = arith.subf %53, %56 : vector<8x8xf32>
    %58 = math.exp %57 : vector<8x8xf32>
    %cst_36 = arith.constant dense<0.000000e+00> : vector<8xf32>
    %59 = vector.multi_reduction <add>, %58, %cst_36 [1] : vector<8x8xf32> to vector<8xf32>
    %60 = vector.shape_cast %59 : vector<8xf32> to vector<8x1xf32>
    %61 = tpu.reciprocal %60 {approx = true} : vector<8x1xf32> -> vector<8x1xf32>
    %62 = vector.broadcast %61 : vector<8x1xf32> to vector<8x8xf32>
    %63 = arith.mulf %58, %62 : vector<8x8xf32>
    %64 = arith.truncf %63 : vector<8x8xf32> to vector<8x8xbf16>
    %c1_37 = arith.constant 1 : index
    %c0_38 = arith.constant 0 : index
    %c0_39 = arith.constant 0 : index
    %65 = vector.load %arg14[%c1_37, %c0_38, %c0_39] : memref<4x8x8xbf16, #tpu.memory_space<vmem>>, vector<1x8x8xbf16>
    %66 = vector.shape_cast %65 : vector<1x8x8xbf16> to vector<8x8xbf16>
    %cst_40 = arith.constant dense<0.000000e+00> : vector<8x8xf32>
    %67 = tpu.matmul %64, %66, %cst_40 {dimension_numbers = #tpu.dot_dimension_numbers<[1], [0], [0], [1], [0, 0, 1, 1], [], []>} : vector<8x8xbf16>, vector<8x8xbf16>, vector<8x8xf32> -> vector<8x8xf32>
    %68 = arith.truncf %67 : vector<8x8xf32> to vector<8x8xbf16>
    %c1_41 = arith.constant 1 : index
    %c0_42 = arith.constant 0 : index
    %c0_43 = arith.constant 0 : index
    %69 = vector.load %arg10[%c1_41, %c0_42, %c0_43] : memref<4x8x32xbf16, #tpu.memory_space<vmem>>, vector<1x8x32xbf16>
    %70 = vector.shape_cast %69 : vector<1x8x32xbf16> to vector<8x32xbf16>
    %cst_44 = arith.constant dense<0.000000e+00> : vector<8x32xf32>
    %71 = tpu.matmul %68, %70, %cst_44 {dimension_numbers = #tpu.dot_dimension_numbers<[1], [0], [0], [1], [0, 0, 1, 1], [], []>} : vector<8x8xbf16>, vector<8x32xbf16>, vector<8x32xf32> -> vector<8x32xf32>
    %72 = arith.addf %42, %71 : vector<8x32xf32>
    %c2 = arith.constant 2 : index
    %c0_45 = arith.constant 0 : index
    %c0_46 = arith.constant 0 : index
    %73 = vector.load %arg4[%c2, %c0_45, %c0_46] : memref<4x32x8xbf16, #tpu.memory_space<vmem>>, vector<1x32x8xbf16>
    %74 = vector.shape_cast %73 : vector<1x32x8xbf16> to vector<32x8xbf16>
    %cst_47 = arith.constant dense<0.000000e+00> : vector<8x8xf32>
    %75 = tpu.matmul %11, %74, %cst_47 {dimension_numbers = #tpu.dot_dimension_numbers<[1], [0], [0], [1], [0, 0, 1, 1], [], []>} : vector<8x32xbf16>, vector<32x8xbf16>, vector<8x8xf32> -> vector<8x8xf32>
    %c2_48 = arith.constant 2 : index
    %c0_49 = arith.constant 0 : index
    %c0_50 = arith.constant 0 : index
    %76 = vector.load %arg5[%c2_48, %c0_49, %c0_50] : memref<4x1x8xf32, #tpu.memory_space<vmem>>, vector<1x1x8xf32>
    %77 = vector.shape_cast %76 : vector<1x1x8xf32> to vector<1x8xf32>
    %78 = vector.broadcast %77 : vector<1x8xf32> to vector<8x8xf32>
    %79 = arith.addf %75, %78 : vector<8x8xf32>
    %80 = arith.truncf %79 : vector<8x8xf32> to vector<8x8xbf16>
    %c2_51 = arith.constant 2 : index
    %c0_52 = arith.constant 0 : index
    %c0_53 = arith.constant 0 : index
    %81 = vector.load %arg13[%c2_51, %c0_52, %c0_53] : memref<4x8x8xbf16, #tpu.memory_space<vmem>>, vector<1x8x8xbf16>
    %82 = vector.shape_cast %81 : vector<1x8x8xbf16> to vector<8x8xbf16>
    "tpu.trace_start"() <{level = 10 : i32, message = "qd,kd->qk"}> : () -> ()
    %cst_54 = arith.constant dense<0.000000e+00> : vector<8x8xf32>
    %83 = tpu.matmul %80, %82, %cst_54 {dimension_numbers = #tpu.dot_dimension_numbers<[1], [1], [0], [0], [0, 0, 1, 0], [], []>} : vector<8x8xbf16>, vector<8x8xbf16>, vector<8x8xf32> -> vector<8x8xf32>
    "tpu.trace_stop"() : () -> ()
    %cst_55 = arith.constant dense<0xFF800000> : vector<8xf32>
    %84 = vector.multi_reduction <maximumf>, %83, %cst_55 [1] : vector<8x8xf32> to vector<8xf32>
    %85 = vector.shape_cast %84 : vector<8xf32> to vector<8x1xf32>
    %86 = vector.broadcast %85 : vector<8x1xf32> to vector<8x8xf32>
    %87 = arith.subf %83, %86 : vector<8x8xf32>
    %88 = math.exp %87 : vector<8x8xf32>
    %cst_56 = arith.constant dense<0.000000e+00> : vector<8xf32>
    %89 = vector.multi_reduction <add>, %88, %cst_56 [1] : vector<8x8xf32> to vector<8xf32>
    %90 = vector.shape_cast %89 : vector<8xf32> to vector<8x1xf32>
    %91 = tpu.reciprocal %90 {approx = true} : vector<8x1xf32> -> vector<8x1xf32>
    %92 = vector.broadcast %91 : vector<8x1xf32> to vector<8x8xf32>
    %93 = arith.mulf %88, %92 : vector<8x8xf32>
    %94 = arith.truncf %93 : vector<8x8xf32> to vector<8x8xbf16>
    %c2_57 = arith.constant 2 : index
    %c0_58 = arith.constant 0 : index
    %c0_59 = arith.constant 0 : index
    %95 = vector.load %arg14[%c2_57, %c0_58, %c0_59] : memref<4x8x8xbf16, #tpu.memory_space<vmem>>, vector<1x8x8xbf16>
    %96 = vector.shape_cast %95 : vector<1x8x8xbf16> to vector<8x8xbf16>
    %cst_60 = arith.constant dense<0.000000e+00> : vector<8x8xf32>
    %97 = tpu.matmul %94, %96, %cst_60 {dimension_numbers = #tpu.dot_dimension_numbers<[1], [0], [0], [1], [0, 0, 1, 1], [], []>} : vector<8x8xbf16>, vector<8x8xbf16>, vector<8x8xf32> -> vector<8x8xf32>
    %98 = arith.truncf %97 : vector<8x8xf32> to vector<8x8xbf16>
    %c2_61 = arith.constant 2 : index
    %c0_62 = arith.constant 0 : index
    %c0_63 = arith.constant 0 : index
    %99 = vector.load %arg10[%c2_61, %c0_62, %c0_63] : memref<4x8x32xbf16, #tpu.memory_space<vmem>>, vector<1x8x32xbf16>
    %100 = vector.shape_cast %99 : vector<1x8x32xbf16> to vector<8x32xbf16>
    %cst_64 = arith.constant dense<0.000000e+00> : vector<8x32xf32>
    %101 = tpu.matmul %98, %100, %cst_64 {dimension_numbers = #tpu.dot_dimension_numbers<[1], [0], [0], [1], [0, 0, 1, 1], [], []>} : vector<8x8xbf16>, vector<8x32xbf16>, vector<8x32xf32> -> vector<8x32xf32>
    %102 = arith.addf %72, %101 : vector<8x32xf32>
    %c3 = arith.constant 3 : index
    %c0_65 = arith.constant 0 : index
    %c0_66 = arith.constant 0 : index
    %103 = vector.load %arg4[%c3, %c0_65, %c0_66] : memref<4x32x8xbf16, #tpu.memory_space<vmem>>, vector<1x32x8xbf16>
    %104 = vector.shape_cast %103 : vector<1x32x8xbf16> to vector<32x8xbf16>
    %cst_67 = arith.constant dense<0.000000e+00> : vector<8x8xf32>
    %105 = tpu.matmul %11, %104, %cst_67 {dimension_numbers = #tpu.dot_dimension_numbers<[1], [0], [0], [1], [0, 0, 1, 1], [], []>} : vector<8x32xbf16>, vector<32x8xbf16>, vector<8x8xf32> -> vector<8x8xf32>
    %c3_68 = arith.constant 3 : index
    %c0_69 = arith.constant 0 : index
    %c0_70 = arith.constant 0 : index
    %106 = vector.load %arg5[%c3_68, %c0_69, %c0_70] : memref<4x1x8xf32, #tpu.memory_space<vmem>>, vector<1x1x8xf32>
    %107 = vector.shape_cast %106 : vector<1x1x8xf32> to vector<1x8xf32>
    %108 = vector.broadcast %107 : vector<1x8xf32> to vector<8x8xf32>
    %109 = arith.addf %105, %108 : vector<8x8xf32>
    %110 = arith.truncf %109 : vector<8x8xf32> to vector<8x8xbf16>
    %c3_71 = arith.constant 3 : index
    %c0_72 = arith.constant 0 : index
    %c0_73 = arith.constant 0 : index
    %111 = vector.load %arg13[%c3_71, %c0_72, %c0_73] : memref<4x8x8xbf16, #tpu.memory_space<vmem>>, vector<1x8x8xbf16>
    %112 = vector.shape_cast %111 : vector<1x8x8xbf16> to vector<8x8xbf16>
    "tpu.trace_start"() <{level = 10 : i32, message = "qd,kd->qk"}> : () -> ()
    %cst_74 = arith.constant dense<0.000000e+00> : vector<8x8xf32>
    %113 = tpu.matmul %110, %112, %cst_74 {dimension_numbers = #tpu.dot_dimension_numbers<[1], [1], [0], [0], [0, 0, 1, 0], [], []>} : vector<8x8xbf16>, vector<8x8xbf16>, vector<8x8xf32> -> vector<8x8xf32>
    "tpu.trace_stop"() : () -> ()
    %cst_75 = arith.constant dense<0xFF800000> : vector<8xf32>
    %114 = vector.multi_reduction <maximumf>, %113, %cst_75 [1] : vector<8x8xf32> to vector<8xf32>
    %115 = vector.shape_cast %114 : vector<8xf32> to vector<8x1xf32>
    %116 = vector.broadcast %115 : vector<8x1xf32> to vector<8x8xf32>
    %117 = arith.subf %113, %116 : vector<8x8xf32>
    %118 = math.exp %117 : vector<8x8xf32>
    %cst_76 = arith.constant dense<0.000000e+00> : vector<8xf32>
    %119 = vector.multi_reduction <add>, %118, %cst_76 [1] : vector<8x8xf32> to vector<8xf32>
    %120 = vector.shape_cast %119 : vector<8xf32> to vector<8x1xf32>
    %121 = tpu.reciprocal %120 {approx = true} : vector<8x1xf32> -> vector<8x1xf32>
    %122 = vector.broadcast %121 : vector<8x1xf32> to vector<8x8xf32>
    %123 = arith.mulf %118, %122 : vector<8x8xf32>
    %124 = arith.truncf %123 : vector<8x8xf32> to vector<8x8xbf16>
    %c3_77 = arith.constant 3 : index
    %c0_78 = arith.constant 0 : index
    %c0_79 = arith.constant 0 : index
    %125 = vector.load %arg14[%c3_77, %c0_78, %c0_79] : memref<4x8x8xbf16, #tpu.memory_space<vmem>>, vector<1x8x8xbf16>
    %126 = vector.shape_cast %125 : vector<1x8x8xbf16> to vector<8x8xbf16>
    %cst_80 = arith.constant dense<0.000000e+00> : vector<8x8xf32>
    %127 = tpu.matmul %124, %126, %cst_80 {dimension_numbers = #tpu.dot_dimension_numbers<[1], [0], [0], [1], [0, 0, 1, 1], [], []>} : vector<8x8xbf16>, vector<8x8xbf16>, vector<8x8xf32> -> vector<8x8xf32>
    %128 = arith.truncf %127 : vector<8x8xf32> to vector<8x8xbf16>
    %c3_81 = arith.constant 3 : index
    %c0_82 = arith.constant 0 : index
    %c0_83 = arith.constant 0 : index
    %129 = vector.load %arg10[%c3_81, %c0_82, %c0_83] : memref<4x8x32xbf16, #tpu.memory_space<vmem>>, vector<1x8x32xbf16>
    %130 = vector.shape_cast %129 : vector<1x8x32xbf16> to vector<8x32xbf16>
    %cst_84 = arith.constant dense<0.000000e+00> : vector<8x32xf32>
    %131 = tpu.matmul %128, %130, %cst_84 {dimension_numbers = #tpu.dot_dimension_numbers<[1], [0], [0], [1], [0, 0, 1, 1], [], []>} : vector<8x8xbf16>, vector<8x32xbf16>, vector<8x32xf32> -> vector<8x32xf32>
    %132 = arith.addf %102, %131 : vector<8x32xf32>
    %c0_85 = arith.constant 0 : index
    %c0_86 = arith.constant 0 : index
    %133 = vector.load %arg11[%c0_85, %c0_86] : memref<1x32xf32, #tpu.memory_space<vmem>>, vector<1x32xf32>
    %134 = vector.broadcast %133 : vector<1x32xf32> to vector<8x32xf32>
    %135 = arith.addf %132, %134 : vector<8x32xf32>
    %c0_87 = arith.constant 0 : index
    %c0_88 = arith.constant 0 : index
    %c0_89 = arith.constant 0 : index
    %136 = vector.load %arg12[%c0_87, %c0_88, %c0_89] : memref<1x8x32xf32, #tpu.memory_space<vmem>>, vector<1x8x32xf32>
    %137 = vector.shape_cast %136 : vector<1x8x32xf32> to vector<8x32xf32>
    %138 = vector.shape_cast %135 : vector<8x32xf32> to vector<1x8x32xf32>
    tpu.vector_store %arg12[%c0_87, %c0_88, %c0_89], %138 {strides = array<i32>} : memref<1x8x32xf32, #tpu.memory_space<vmem>>, vector<1x8x32xf32>,
    return
  }
  func.func @transform_0(%arg0: i32, %arg1: i32) -> (i32, i32, i32) {
    %c0_i32 = arith.constant 0 : i32
    %c0_i32_0 = arith.constant 0 : i32
    %c0_i32_1 = arith.constant 0 : i32
    return %arg0, %c0_i32, %c0_i32_0 : i32, i32, i32
  }
  func.func @transform_1(%arg0: i32, %arg1: i32) -> (i32, i32, i32) {
    %c0_i32 = arith.constant 0 : i32
    %c0_i32_0 = arith.constant 0 : i32
    %c0_i32_1 = arith.constant 0 : i32
    return %arg0, %c0_i32, %c0_i32_0 : i32, i32, i32
  }
  func.func @transform_2(%arg0: i32, %arg1: i32) -> (i32, i32, i32) {
    %c0_i32 = arith.constant 0 : i32
    %c0_i32_0 = arith.constant 0 : i32
    %c0_i32_1 = arith.constant 0 : i32
    %c0_i32_2 = arith.constant 0 : i32
    return %c0_i32, %c0_i32_0, %c0_i32_1 : i32, i32, i32
  }
  func.func @transform_3(%arg0: i32, %arg1: i32) -> (i32, i32, i32) {
    %c0_i32 = arith.constant 0 : i32
    %c0_i32_0 = arith.constant 0 : i32
    %c0_i32_1 = arith.constant 0 : i32
    %c0_i32_2 = arith.constant 0 : i32
    return %c0_i32, %c0_i32_0, %c0_i32_1 : i32, i32, i32
  }
  func.func @transform_4(%arg0: i32, %arg1: i32) -> (i32, i32, i32) {
    %c0_i32 = arith.constant 0 : i32
    %c0_i32_0 = arith.constant 0 : i32
    %c0_i32_1 = arith.constant 0 : i32
    %c0_i32_2 = arith.constant 0 : i32
    return %c0_i32, %c0_i32_0, %c0_i32_1 : i32, i32, i32
  }
  func.func @transform_5(%arg0: i32, %arg1: i32) -> (i32, i32, i32) {
    %c0_i32 = arith.constant 0 : i32
    %c0_i32_0 = arith.constant 0 : i32
    %c0_i32_1 = arith.constant 0 : i32
    %c0_i32_2 = arith.constant 0 : i32
    return %c0_i32, %c0_i32_0, %c0_i32_1 : i32, i32, i32
  }
  func.func @transform_6(%arg0: i32, %arg1: i32) -> (i32, i32, i32) {
    %c0_i32 = arith.constant 0 : i32
    %c0_i32_0 = arith.constant 0 : i32
    %c0_i32_1 = arith.constant 0 : i32
    %c0_i32_2 = arith.constant 0 : i32
    return %c0_i32, %c0_i32_0, %c0_i32_1 : i32, i32, i32
  }
  func.func @transform_7(%arg0: i32, %arg1: i32) -> (i32, i32, i32) {
    %c0_i32 = arith.constant 0 : i32
    %c0_i32_0 = arith.constant 0 : i32
    %c0_i32_1 = arith.constant 0 : i32
    %c0_i32_2 = arith.constant 0 : i32
    return %c0_i32, %c0_i32_0, %c0_i32_1 : i32, i32, i32
  }
  func.func @transform_8(%arg0: i32, %arg1: i32) -> (i32, i32, i32) {
    %c0_i32 = arith.constant 0 : i32
    %c0_i32_0 = arith.constant 0 : i32
    %c0_i32_1 = arith.constant 0 : i32
    %c0_i32_2 = arith.constant 0 : i32
    return %c0_i32, %c0_i32_0, %c0_i32_1 : i32, i32, i32
  }
  func.func @transform_9(%arg0: i32, %arg1: i32) -> (i32, i32) {
    %c0_i32 = arith.constant 0 : i32
    %c0_i32_0 = arith.constant 0 : i32
    %c0_i32_1 = arith.constant 0 : i32
    return %c0_i32, %c0_i32_0 : i32, i32
  }
  func.func @transform_10(%arg0: i32, %arg1: i32) -> (i32, i32, i32) {
    %c0_i32 = arith.constant 0 : i32
    %c0_i32_0 = arith.constant 0 : i32
    return %arg0, %arg1, %c0_i32 : i32, i32, i32
  }
}

</mosaic_0001>

<bundles_post_ra>
// kernel: tpu_custom_call.1
= control target key start
LH: loop header
LB: loop body
LE: loop exit
PB: predicated region body
PF: predicated region fallthrough
CT: control target
= control target key end

     0   :  { %s2936_s0 = inlined_call_operand.vmem [shape: bf16[2,8,32], index: 0, kind: input, shape index: {}]   ;;  %s2937_s1 = inlined_call_operand.vmem [shape: bf16[2,8,32], index: 1, kind: input, shape index: {}]   ;;  %s2938_s2 = inlined_call_operand.vmem [shape: bf16[4,32,8], index: 2, kind: input, shape index: {}]   ;;  %s2939_s3 = inlined_call_operand.vmem [shape: f32[4,1,8], index: 3, kind: input, shape index: {}]   ;;  %s2940_s4 = inlined_call_operand.vmem [shape: bf16[4,32,8], index: 4, kind: input, shape index: {}]   ;;  %s2941_s5 = inlined_call_operand.vmem [shape: f32[4,1,8], index: 5, kind: input, shape index: {}]   ;;  %s2942_s6 = inlined_call_operand.vmem [shape: bf16[4,32,8], index: 6, kind: input, shape index: {}]   ;;  %s2943_s7 = inlined_call_operand.vmem [shape: f32[4,1,8], index: 7, kind: input, shape index: {}]   ;;  %s2944_s8 = inlined_call_operand.vmem [shape: bf16[4,8,32], index: 8, kind: input, shape index: {}]   ;;  %s2945_s9 = inlined_call_operand.vmem [shape: f32[1,32], index: 9, kind: input, shape index: {}]   ;;  %s2946_s10 = inlined_call_operand.hbm [shape: f32[2,8,32], index: 10, kind: output, shape index: {}]  }
   0x1   :  { %2947 = sst [smem:[#allocation7_spill]] %s2936_s0 }
   0x2   :  { %15 = vsyncpa [#allocation5], 0 }
   0x3   :  { %17 = vsyncpa [#allocation5 + $0x1], 0  ;;  %s2537_s13 = smov 0   ;;  %s2539_s14 = smov 0  }
   0x4   :  { %s2541_s15 = smov 0   ;;  %s2543_s16 = smov 0  }
   0x5   :  { %s2545_s17 = smov 0   ;;  %s2547_s18 = smov 0  }
   0x6 LB: > { %s1953_s19 = sadd.s32 4294967295, %s2477_s18   ;;  %s1954_s20 = sadd.s32 4294967294, %s2477_s18   ;;  %s2477_s18 = sphi %s2547_s18, %s23_s18   ;;  %s2473_s17 = sphi %s2545_s17, %s2955_s17   ;;  %s2469_s16 = sphi %s2543_s16, %s2954_s16   ;;  %s2465_s15 = sphi %s2541_s15, %s2953_s15   ;;  %s2461_s14 = sphi %s2539_s14, %s2952_s14   ;;  %s2457_s13 = sphi %s2537_s13, %s2951_s13  }
   0x7   : > { %s35_s21 = sadd.s32 1, %s2473_s17  ;;  %s264_s22 = sadd.s32 1, %s2465_s15 }
   0x8   : > { %p37_p0 = scmp.ge.s32.totalorder %s35_s21, 2  ;;  %p274_p1 = scmp.ne.s32.totalorder %s2465_s15, %s2461_s14 }
   0x9   : > { %p275_p2 = scmp.eq.s32.totalorder %s1953_s19, 1  ;;  %p280_p3 = scmp.ne.s32.totalorder %s2461_s14, %s2457_s13 }
   0xa   : > { %s2957_s21 = smov (%p37_p0, %s35_s21), 0  ;;  %p281_p5 = scmp.eq.s32.totalorder %s1954_s20, 1 }
   0xb   : > { %p2577_p4 = por %p275_p2, %p274_p1  ;;  %s259_s24 = ssub.s32 %s2473_s17, %s2957_s21 }
   0xc   : > { %p1957_p6 = scmp.ge.s32.totalorder %s2477_s18, 1  ;;  %p262_p7 = scmp.eq.s32.totalorder %s259_s24, 0 }
   0xd   : > { %p2584_p8 = por %p281_p5, %p280_p3  ;;  %p337_p9 = scmp.lt.s32.totalorder %s2477_s18, 3 }
   0xe   : > { %s2590_s26 = scalar_select %p262_p7, %s2465_s15, %s264_s22  }
   0xf   : > { %p338_p10 = pnand %p1957_p6, %p337_p9 }
  0x10   : > { %v2359_v0 = vld [vmem:[%s2940_s4] sm:$0xff] (!%p338_p10)   ;;  %v2479_v1 = vmov (!%p338_p10), 0.0   ;;  %v2360_v2 = vld [vmem:[%s2940_s4 + $0x8] sm:$0xff] (!%p338_p10)   ;;  %vm2480_vm0 = vmmov (!%p338_p10), 0   ;;  %p378_p11 = scmp.lt.s32.totalorder (!%p338_p10), %s2469_s16, 1  ;;  %s2950_s0 = sld [smem:[#allocation7_spill]] (!%p338_p10) }
  0x11   : > { %341 = sbr.rel (%p338_p10) target bundleno = 3506 (0xdb2), region = 60  ;;  %2134 = vmatprep.subr.bf16.mxu0 (!%p338_p10), %v2479_v1  ;;  %2142 = vmatprep.subr.bf16.mxu1 (!%p338_p10), %v2479_v1  ;;  %vm417_vm1 = vcmask (!%p338_p10), 261120   ;;  %v2361_v5 = vld [vmem:[%s2940_s4 + $0x10] sm:$0xff] (!%p338_p10)   ;;  %v2362_v7 = vld [vmem:[%s2940_s4 + $0x18] sm:$0xff] (!%p338_p10)   ;;  %v2369_v8 = vld [vmem:[%s2942_s6] sm:$0xff] (!%p338_p10)   ;;  %vm462_vm2 = vcmask (!%p338_p10), 60416  }
  0x12   : > { %2135 = vmatpush3.bf16.msra.mxu0 (!%p338_p10), %v2359_v0  ;;  %2138 = vmatprep.mubr.msk.bf16.mxu0 (!%p338_p10), %vm2480_vm0, %v2479_v1  ;;  %v2370_v9 = vld [vmem:[%s2942_s6 + $0x8] sm:$0xff] (!%p338_p10)   ;;  %v2363_v10 = vld [vmem:[%s2940_s4 + $0x20] sm:$0xff] (!%p338_p10)   ;;  %v2371_v11 = vld [vmem:[%s2942_s6 + $0x10] sm:$0xff] (!%p338_p10)   ;;  %vm1019_vm3 = vcmask (!%p338_p10), 64512   ;;  %vm1082_vm4 = vcmask (!%p338_p10), 1043456  }
  0x13   : > { %2136 = vmatprep.subr.bf16.mxu0 (!%p338_p10), %v2479_v1  ;;  %2146 = vmatprep.mubr.msk.bf16.mxu1 (!%p338_p10), %vm2480_vm0, %v2479_v1  ;;  %v2364_v12 = vld [vmem:[%s2940_s4 + $0x28] sm:$0xff] (!%p338_p10)   ;;  %v2372_v13 = vld [vmem:[%s2942_s6 + $0x18] sm:$0xff] (!%p338_p10)   ;;  %v2365_v14 = vld [vmem:[%s2940_s4 + $0x30] sm:$0xff] (!%p338_p10)  }
  0x14   : > { %2143 = vmatpush3.bf16.msra.mxu1 (!%p338_p10), %v2369_v8  ;;  %v2373_v15 = vld [vmem:[%s2942_s6 + $0x20] sm:$0xff] (!%p338_p10)   ;;  %v2366_v16 = vld [vmem:[%s2940_s4 + $0x38] sm:$0xff] (!%p338_p10)   ;;  %v2374_v17 = vld [vmem:[%s2942_s6 + $0x28] sm:$0xff] (!%p338_p10)  }
  0x15   : > { %2144 = vmatprep.subr.bf16.mxu1 (!%p338_p10), %v2479_v1  ;;  %v2367_v18 = vld [vmem:[%s2938_s2] sm:$0xff] (!%p338_p10)   ;;  %v2368_v21 = vld [vmem:[%s2938_s2 + $0x8] sm:$0xff] (!%p338_p10)   ;;  %v2375_v23 = vld [vmem:[%s2942_s6 + $0x30] sm:$0xff] (!%p338_p10)  }
  0x16   : > { %2137 = vmatpush3.bf16.msra.mxu0 (!%p338_p10), %v2360_v2  ;;  %v2376_v24 = vld [vmem:[%s2942_s6 + $0x38] sm:$0xff] (!%p338_p10)   ;;  %v1961_v25 = vld [vmem:[%s2941_s5] ss:$0 sm:$0xff] (!%p338_p10)  ;;  %v1974_v32 = vld [vmem:[%s2941_s5 + $0x1] ss:$0 sm:$0xff] (!%p338_p10) }
  0x17   : > { %2150 = vmatprep.subr.bf16.mxu0 (!%p338_p10), %v2479_v1  ;;  %v1965_v34 = vld [vmem:[%s2943_s7] ss:$0 sm:$0xff] (!%p338_p10)  ;;  %v1992_v48 = vld [vmem:[%s2941_s5 + $0x2] ss:$0 sm:$0xff] (!%p338_p10)  ;;  %v1983_v50 = vld [vmem:[%s2943_s7 + $0x1] ss:$0 sm:$0xff] (!%p338_p10) }
  0x18   : > { %s379_s11 = scalar_select %p378_p11, %s2469_s16, 1  ;;  %2145 = vmatpush3.bf16.msra.mxu1 %v2370_v9  ;;  %v2010_v62 = vld [vmem:[%s2941_s5 + $0x3] ss:$0 sm:$0xff] }
  0x19   : > { %2158 = vmatprep.subr.bf16.mxu1 %v2479_v1 }
  0x1a   : > { %s1959_s12 = sshll.u32 %s379_s11, 2  ;;  %s375_s11 = sand.u32 1, %s2461_s14  }
  0x1b   : > { %s2610_s22 = scalar_lea.vmem %s2950_s0, %s1959_s12  ;;  %s2615_s28 = scalar_lea.vmem %s2937_s1, %s1959_s12 }
  0x1c   : > { %v2619_v3 = vld [vmem:[%s2610_s22] sm:$0xf]  ;;  %s1958_s19 = sshll.u32 %s375_s11, 3  ;;  %s2071_s12 = sshll.u32 %s2469_s16, 7 }
  0x1d   : > { %v392_v4 = vld [vmem:[%s2615_s28] sm:$0xf]  ;;  %2147 = vmatmul.mubr.msk.bf16.vlgmr.msra.gmra.mrb[0].mxu1 %vm417_vm1, %v2619_v3  ;;  %s377_s20 = scalar_lea.vmem [#allocation4], %s1958_s19  ;;  %s2888_s30 = scalar_lea.hbm %s2946_s10, %s2071_s12 }
  0x1e   : > { %v393_v6 = vadd.bf16 %v392_v4, %v2619_v3  ;;  %2159 = vmatpush3.bf16.msra.mxu1 %v2371_v11  ;;  %2162 = vmatprep.mubr.msk.bf16.mxu1 %vm2480_vm0, %v2479_v1  ;;  %v945_v19 = vld [vmem:[%s2610_s22] sm:$0xf]  ;;  %s1869_s24 = sshll.u32 %s377_s20, 4  ;;  %s1855_s16 = scalar_lea.sflag [#allocation5], %s375_s11  ;;  %s2890_s24 = int_to_ptr.vmem [resolvable:$true] %s1869_s24 }
  0x1f   : > { %2160 = vmatprep.subr.bf16.mxu1 %v2479_v1  ;;  %v948_v20 = vld [vmem:[%s2615_s28] sm:$0xf]  ;;  %s2399_s19 = scalar_lea.vmem %s2890_s24, 128  ;;  %s2481_s22 = smov [#allocation4]  }
  0x20   : > { %2139 = vmatmul.mubr.msk.bf16.vlgmr.msra.gmra.mrb[0].mxu0 %vm417_vm1, %v393_v6  ;;  %v2704_v22 = vadd.bf16 %v948_v20, %v945_v19  ;;  %v2377_v20 = vld [vmem:[%s2938_s2 + $0x10] sm:$0xff]   ;;  %p2400_p12 = scmp.ne.s32.totalorder %s2890_s24, %s2399_s19  ;;  %s2403_s28 = sshll.u32 %s2481_s22, 4  ;;  %s2404_s28 = int_to_ptr.vmem [resolvable:$false] %s2403_s28 }
  0x21   : > { %2151 = vmatpush3.bf16.msra.mxu0 %v2361_v5  ;;  %2154 = vmatprep.mubr.msk.bf16.mxu0 %vm2480_vm0, %v2479_v1  ;;  %s2405_s0 = scalar_lea.vmem %s2404_s28, 256  ;;  %p2406_p1 = scmp.lt.s32.totalorder %s2890_s24, %s2404_s28 }
  0x22   : > { %2152 = vmatprep.subr.bf16.mxu0 %v2479_v1  ;;  %2161 = vmatpush3.bf16.msra.mxu1 %v2372_v13  ;;  %p2401_p13 = pnand %p2400_p12, %p2577_p4  ;;  %p2407_p2 = scmp.lt.s32.totalorder %s2405_s0, %s2399_s19 }
  0x23   : > { %2174 = vmatprep.subr.bf16.mxu1 %v2479_v1 }
  0x24   : > { %p2402_p0 = pneg %p2401_p13  ;;  %p2408_p3 = por %p2407_p2, %p2406_p1 }
  0x25   : > { %2153 = vmatpush3.bf16.msra.mxu0 %v2362_v7  ;;  %2163 = vmatmul.mubr.msk.bf16.vlgmr.msra.gmra.mrb[4].mxu1 %vm417_vm1, %v2619_v3 }
  0x26   : > { %2166 = vmatprep.subr.bf16.mxu0 %v2479_v1  ;;  %2175 = vmatpush3.bf16.msra.mxu1 %v2373_v15  ;;  %v2023_v15 = vld [vmem:[%s2939_s3] ss:$0 sm:$0xff]  ;;  %p2409_p5 = pnand %p2408_p3, %p2402_p0 }
  0x27   : > { %2178 = vmatprep.mubr.msk.bf16.mxu1 %vm2480_vm0, %v2479_v1  ;;  %2176 = vmatprep.subr.bf16.mxu1 %v2479_v1 }
  0x28   : > { %2155 = vmatmul.mubr.msk.bf16.vlgmr.msra.gmra.mrb[4].mxu0 %vm417_vm1, %v393_v6 }
  0x29   : > { %2167 = vmatpush3.bf16.msra.mxu0 %v2363_v10  ;;  %2170 = vmatprep.mubr.msk.bf16.mxu0 %vm2480_vm0, %v2479_v1 }
  0x2a   : > { %2168 = vmatprep.subr.bf16.mxu0 %v2479_v1  ;;  %2177 = vmatpush3.bf16.msra.mxu1 %v2374_v17 }
  0x2b   : > { %2190 = vmatprep.subr.bf16.mxu1 %v2479_v1 }
  0x2d   : > { %2169 = vmatpush3.bf16.msra.mxu0 %v2364_v12  ;;  %2179 = vmatmul.mubr.msk.bf16.vlgmr.msra.gmra.mrb[8].mxu1 %vm417_vm1, %v2619_v3 }
  0x2e   : > { %2182 = vmatprep.subr.bf16.mxu0 %v2479_v1  ;;  %2194 = vmatprep.mubr.msk.bf16.mxu1 %vm2480_vm0, %v2479_v1 }
  0x2f   : > { %2191 = vmatpush3.bf16.msra.mxu1 %v2375_v23 }
  0x30   : > { %2171 = vmatmul.mubr.msk.bf16.vlgmr.msra.gmra.mrb[8].mxu0 %vm417_vm1, %v393_v6  ;;  %2192 = vmatprep.subr.bf16.mxu1 %v2479_v1 }
  0x31   : > { %2183 = vmatpush3.bf16.msra.mxu0 %v2365_v14  ;;  %2186 = vmatprep.mubr.msk.bf16.mxu0 %vm2480_vm0, %v2479_v1 }
  0x32   : > { %2184 = vmatprep.subr.bf16.mxu0 %v2479_v1 }
  0x33   : > { %2193 = vmatpush3.bf16.msra.mxu1 %v2376_v24  ;;  %v2378_v24 = vld [vmem:[%s2938_s2 + $0x18] sm:$0xff]  }
  0x34   : > { %2206 = vmatprep.subr.bf16.mxu1 %v2479_v1 }
  0x35   : > { %2185 = vmatpush3.bf16.msra.mxu0 %v2366_v16 }
  0x36   : > { %2198 = vmatprep.subr.bf16.mxu0 %v2479_v1  ;;  %2195 = vmatmul.mubr.msk.bf16.vlgmr.msra.gmra.mrb[12].mxu1 %vm417_vm1, %v2619_v3  ;;  %v2001_v3 = vld [vmem:[%s2943_s7 + $0x2] ss:$0 sm:$0xff] }
  0x37   : > { %2208 = vmatprep.mubr.msk.bf16.mxu1 %vm2480_vm0, %v2479_v1 }
  0x38   : > { %2187 = vmatmul.mubr.msk.bf16.vlgmr.msra.gmra.mrb[12].mxu0 %vm417_vm1, %v393_v6 }
  0x39   : > { %2199 = vmatpush3.bf16.msra.mxu0 %v2367_v18  ;;  %2202 = vmatprep.mubr.msk.bf16.mxu0 %vm2480_vm0, %v2479_v1 }
  0x3a   : > { %2200 = vmatprep.subr.bf16.mxu0 %v2479_v1 }
  0x3d   : > { %2201 = vmatpush3.bf16.msra.mxu0 %v2368_v21 }
  0x3e   : > { %2212 = vmatprep.subr.bf16.mxu0 %v2479_v1 }
  0x40   : > { %2203 = vmatmul.mubr.msk.bf16.vlgmr.msra.gmra.mrb[16].mxu0 %vm417_vm1, %v2704_v22 }
  0x41   : > { %2214 = vmatprep.mubr.msk.bf16.mxu0 %vm2480_vm0, %v2479_v1 }
  0xf0   : > { %v524_v38 = vpop.f32.mrb[0].mxu1 }
  0xf1   : > { %v525_v41 = vadd.f32 %v1965_v34, %v524_v38  ;;  %v2148_v42 = vpop.f32.mrb[1].mxu1 }
  0xf2   : > { %v527_v44 = vpop.f32.mrb[2].mxu1 }
  0xf3   : > { %v455_v26 = vpop.f32.mrb[0].mxu0  ;;  %v530_v46 = vpack.c.bf16 %v525_v41, %v525_v41  ;;  %v2149_v47 = vpop.f32.mrb[3].mxu1 }
  0xf4   : > { %v456_v27 = vadd.f32 %v1961_v25, %v455_v26  ;;  %v2140_v28 = vpop.f32.mrb[1].mxu0 }
  0xf5   : > { %v458_v29 = vpop.f32.mrb[2].mxu0  ;;  %531 = vst.msk [vmem:[#allocation3] sm:$0xf] %vm462_vm2, %v530_v46 }
  0xf6   : > { %v461_v30 = vpack.c.bf16 %v456_v27, %v456_v27  ;;  %v2141_v31 = vpop.f32.mrb[3].mxu0  ;;  %v2019_v27 = vld [vmem:[%s2943_s7 + $0x3] ss:$0 sm:$0xff] }
  0xf8   : > { %463 = vst.msk [vmem:[#allocation2] sm:$0xf] %vm462_vm2, %v461_v30  ;;  %v659_v54 = vpop.f32.mrb[4].mxu1 }
  0xf9   : > { %v660_v57 = vadd.f32 %v1983_v50, %v659_v54  ;;  %v2164_v58 = vpop.f32.mrb[5].mxu1 }
  0xfa   : > { %v662_v59 = vpop.f32.mrb[6].mxu1 }
  0xfb   : > { %v591_v33 = vpop.f32.mrb[4].mxu0  ;;  %v665_v60 = vpack.c.bf16 %v660_v57, %v660_v57  ;;  %v2165_v61 = vpop.f32.mrb[7].mxu1 }
  0xfc   : > { %v592_v35 = vadd.f32 %v1974_v32, %v591_v33  ;;  %v2156_v36 = vpop.f32.mrb[5].mxu0  ;;  %v1078_v63 = vld [vmem:[#allocation3] sm:$0xf] }
  0xfd   : > { %v594_v37 = vpop.f32.mrb[6].mxu0  ;;  %667 = vst.msk [vmem:[#allocation3 + $0x4] sm:$0xf] %vm462_vm2, %v665_v60  ;;  %v1084_v0 = vsel %vm1082_vm4, %v1078_v63, 0 }
  0xfe   : > { %v597_v39 = vpack.c.bf16 %v592_v35, %v592_v35  ;;  %v2157_v40 = vpop.f32.mrb[7].mxu0  ;;  %2213 = vmatpush3.bf16.msra.mxu0 %v1084_v0 }
  0xff   : > { %v1018_v43 = vld [vmem:[#allocation2] sm:$0xf]  ;;  %2226 = vmatprep.subr.bf16.mxu0 %v2479_v1 }
 0x100   : > { %599 = vst.msk [vmem:[#allocation2 + $0x4] sm:$0xf] %vm462_vm2, %v597_v39  ;;  %v1024_v45 = vsel %vm1019_vm3, %v1018_v43, 0  ;;  %v795_v7 = vpop.f32.mrb[8].mxu1 }
 0x101   : > { %2207 = vmatpush3.bf16.xpose.msra.mxu1 %v1024_v45  ;;  %v796_v10 = vadd.f32 %v2001_v3, %v795_v7  ;;  %v2180_v11 = vpop.f32.mrb[9].mxu1 }
 0x102   : > { %2218 = vmatprep.subr.bf16.mxu1 %v2479_v1  ;;  %v798_v12 = vpop.f32.mrb[10].mxu1 }
 0x103   : > { %v727_v49 = vpop.f32.mrb[8].mxu0  ;;  %v801_v13 = vpack.c.bf16 %v796_v10, %v796_v10  ;;  %v2181_v14 = vpop.f32.mrb[11].mxu1  ;;  %v1127_v12 = vld [vmem:[%s2944_s8] sm:$0xf] }
 0x104   : > { %v728_v51 = vadd.f32 %v1992_v48, %v727_v49  ;;  %v2172_v52 = vpop.f32.mrb[9].mxu0  ;;  %v1255_v25 = vld [vmem:[#allocation3 + $0x4] sm:$0xf] }
 0x105   : > { %v730_v53 = vpop.f32.mrb[10].mxu0  ;;  %803 = vst.msk [vmem:[#allocation3 + $0x8] sm:$0xf] %vm462_vm2, %v801_v13  ;;  %v1260_v26 = vsel %vm1082_vm4, %v1255_v25, 0  ;;  %v2034_v52 = vld [vmem:[%s2939_s3 + $0x1] ss:$0 sm:$0xff] }
 0x106   : > { %v733_v55 = vpack.c.bf16 %v728_v51, %v728_v51  ;;  %v2173_v56 = vpop.f32.mrb[11].mxu0 }
 0x107   : > { %v1195_v51 = vld [vmem:[#allocation2 + $0x4] sm:$0xf] }
 0x108   : > { %735 = vst.msk [vmem:[#allocation2 + $0x8] sm:$0xf] %vm462_vm2, %v733_v55  ;;  %v1200_v54 = vsel %vm1019_vm3, %v1195_v51, 0 }
 0x109   : > { %v931_v28 = vpop.f32.mrb[12].mxu1 }
 0x10a   : > { %v932_v29 = vadd.f32 %v2019_v27, %v931_v28  ;;  %v2196_v30 = vpop.f32.mrb[13].mxu1 }
 0x10b   : > { %v863_v2 = vpop.f32.mrb[12].mxu0  ;;  %v934_v31 = vpop.f32.mrb[14].mxu1 }
 0x10c   : > { %v864_v4 = vadd.f32 %v2010_v62, %v863_v2  ;;  %v2188_v5 = vpop.f32.mrb[13].mxu0  ;;  %v937_v32 = vpack.c.bf16 %v932_v29, %v932_v29  ;;  %v2197_v33 = vpop.f32.mrb[15].mxu1  ;;  %v1524_v28 = vld [vmem:[#allocation3 + $0x8] sm:$0xf] }
 0x10d   : > { %v866_v6 = vpop.f32.mrb[14].mxu0 }
 0x10e   : > { %v869_v8 = vpack.c.bf16 %v864_v4, %v864_v4  ;;  %v2189_v9 = vpop.f32.mrb[15].mxu0  ;;  %939 = vst.msk [vmem:[#allocation3 + $0xc] sm:$0xf] %vm462_vm2, %v937_v32  ;;  %v1529_v32 = vsel %vm1082_vm4, %v1524_v28, 0 }
 0x110   : > { %871 = vst.msk [vmem:[#allocation2 + $0xc] sm:$0xf] %vm462_vm2, %v869_v8  ;;  %v2040_v8 = vld [vmem:[%s2944_s8 + $0x4] sm:$0xf] }
 0x111   : > { %v1309_v9 = vsel %vm1082_vm4, %v2040_v8, 0 }
 0x113   : > { %v1011_v16 = vpop.f32.mrb[16].mxu0 }
 0x114   : > { %v1012_v17 = vadd.f32 %v2023_v15, %v1011_v16  ;;  %v2204_v18 = vpop.f32.mrb[17].mxu0  ;;  %v1355_v15 = vsel %vm1082_vm4, %v1127_v12, 0 }
 0x115   : > { %v1014_v19 = vpop.f32.mrb[18].mxu0 }
 0x116   : > { %v1017_v21 = vpack.c.bf16 %v1012_v17, %v1012_v17  ;;  %v2205_v23 = vpop.f32.mrb[19].mxu0  ;;  %v1464_v17 = vld [vmem:[#allocation2 + $0x8] sm:$0xf] }
 0x117   : > { %v1469_v18 = vsel %vm1019_vm3, %v1464_v17, 0 }
 0x118   : > { %2209 = vmatmul.mubr.msk.bf16.vlgmr.msra.gmra.mrb[16].mxu1 %vm1019_vm3, %v1017_v21 }
 0x119   : > { %2219 = vmatpush3.bf16.msra.mxu1 %v2377_v20  ;;  %2222 = vmatprep.mubr.msk.bf16.mxu1 %vm2480_vm0, %v2479_v1  ;;  %v2379_v20 = vld [vmem:[%s2938_s2 + $0x20] sm:$0xff]  }
 0x11a   : > { %2220 = vmatprep.subr.bf16.mxu1 %v2479_v1 }
 0x11d   : > { %2221 = vmatpush3.bf16.msra.mxu1 %v2378_v24 }
 0x11e   : > { %2232 = vmatprep.subr.bf16.mxu1 %v2479_v1 }
 0x120   : > { %2223 = vmatmul.mubr.msk.bf16.vlgmr.msra.gmra.mrb[20].mxu1 %vm417_vm1, %v2704_v22 }
 0x121   : > { %2233 = vmatpush3.bf16.msra.mxu1 %v1260_v26  ;;  %2234 = vmatprep.mubr.msk.bf16.mxu1 %vm2480_vm0, %v2479_v1  ;;  %v2380_v26 = vld [vmem:[%s2938_s2 + $0x28] sm:$0xff]  }
 0x122   : > { %2244 = vmatprep.subr.bf16.mxu1 %v2479_v1 }
 0x1eb   : > { %v1060_v34 = vpop.f32.mrb[16].mxu1 }
 0x1ec   : > { %v2210_v35 = vpop.f32.mrb[17].mxu1  ;;  %v1066_v36 = vsel %vm1019_vm3, %v1060_v34, -inf }
 0x1ed   : > { %1067 = vmax.xlane.f32.xlu0 %v1066_v36  ;;  %v1063_v37 = vpop.f32.mrb[18].mxu1 }
 0x1ee   : > { %v2211_v38 = vpop.f32.mrb[19].mxu1 }
 0x1ef   : > { %v2048_v38 = vld [vmem:[%s2939_s3 + $0x2] ss:$0 sm:$0xff] }
 0x1f3   : > { %v1187_v44 = vpop.f32.mrb[20].mxu1 }
 0x1f4   : > { %v2224_v45 = vpop.f32.mrb[21].mxu1  ;;  %v1188_v55 = vadd.f32 %v2034_v52, %v1187_v44 }
 0x1f5   : > { %v1190_v46 = vpop.f32.mrb[22].mxu1 }
 0x1f6   : > { %v2225_v47 = vpop.f32.mrb[23].mxu1  ;;  %v1193_v56 = vpack.c.bf16 %v1188_v55, %v1188_v55  ;;  %v2054_v55 = vld [vmem:[%s2944_s8 + $0x8] sm:$0xf] }
 0x27a   : > { %v1068_v39 = vpop.xlane.xlu0 %1067 }
 0x27b   : > { %v1069_v40 = vsub.f32 %v1060_v34, %v1068_v39 }
 0x27d   : > { %v1070_v41 = vmul.f32 1.442695, %v1069_v40 }
 0x27f   : > { %2383 = vpow2.f32 %v1070_v41 }
 0x289   : > { %v2384_v42 = vpop.eup %2383 }
 0x28a   : > { %v1072_v43 = vsel %vm1019_vm3, %v2384_v42, 0.0 }
 0x28b   : > { %1073 = vadd.xlane.f32.xlu0 %v1072_v43 }
 0x318   : > { %v1074_v48 = vpop.xlane.xlu0 %1073 }
 0x319   : > { %2385 = vrcp.f32 %v1074_v48 }
 0x323   : > { %v2386_v49 = vpop.eup %2385 }
 0x324   : > { %v1076_v50 = vmul.f32 %v2386_v49, %v2384_v42 }
 0x326   : > { %v1077_v53 = vpack.c.bf16 %v1076_v50, %v1076_v50 }
 0x328   : > { %2215 = vmatmul.mubr.msk.bf16.vlgmr.msra.gmra.mrb[20].mxu0 %vm1019_vm3, %v1077_v53 }
 0x329   : > { %2227 = vmatpush3.bf16.xpose.msra.mxu0 %v1200_v54  ;;  %2228 = vmatprep.mubr.msk.bf16.mxu0 %vm2480_vm0, %v2479_v1 }
 0x32a   : > { %2238 = vmatprep.subr.bf16.mxu0 %v2479_v1 }
 0x330   : > { %2229 = vmatmul.mubr.msk.bf16.vlgmr.msra.gmra.mrb[24].mxu0 %vm1019_vm3, %v1193_v56  ;;  %v1578_v56 = vsel %vm1082_vm4, %v2054_v55, 0 }
 0x331   : > { %2240 = vmatprep.mubr.msk.bf16.mxu0 %vm2480_vm0, %v2479_v1  ;;  %2239 = vmatpush3.bf16.msra.mxu0 %v1309_v9 }
 0x332   : > { %2250 = vmatprep.subr.bf16.mxu0 %v2479_v1 }
 0x3fb   : > { %v1120_v57 = vpop.f32.mrb[20].mxu0 }
 0x3fc   : > { %v2216_v58 = vpop.f32.mrb[21].mxu0  ;;  %v1126_v16 = vpack.c.bf16 %v1120_v57, %v1120_v57 }
 0x3fd   : > { %v1123_v59 = vpop.f32.mrb[22].mxu0 }
 0x3fe   : > { %v2217_v60 = vpop.f32.mrb[23].mxu0 }
 0x3ff   : > { %v2381_v60 = vld [vmem:[%s2938_s2 + $0x30] sm:$0xff]  }
 0x403   : > { %v1236_v61 = vpop.f32.mrb[24].mxu0 }
 0x404   : > { %v2230_v62 = vpop.f32.mrb[25].mxu0  ;;  %v1242_v63 = vsel %vm1019_vm3, %v1236_v61, -inf }
 0x405   : > { %1243 = vmax.xlane.f32.xlu1 %v1242_v63  ;;  %v1239_v0 = vpop.f32.mrb[26].mxu0  ;;  %v2382_v62 = vld [vmem:[%s2938_s2 + $0x38] sm:$0xff]  }
 0x406   : > { %v2231_v2 = vpop.f32.mrb[27].mxu0  ;;  %v1748_v63 = vld [vmem:[#allocation3 + $0xc] sm:$0xf] }
 0x407   : > { %v1753_v0 = vsel %vm1082_vm4, %v1748_v63, 0 }
 0x492   : > { %v1244_v3 = vpop.xlane.xlu1 %1243 }
 0x493   : > { %v1245_v4 = vsub.f32 %v1236_v61, %v1244_v3  ;;  %v1688_v3 = vld [vmem:[#allocation2 + $0xc] sm:$0xf] }
 0x494   : > { %v1693_v8 = vsel %vm1019_vm3, %v1688_v3, 0 }
 0x495   : > { %v1246_v5 = vmul.f32 1.442695, %v1245_v4 }
 0x497   : > { %2387 = vpow2.f32 %v1246_v5 }
 0x4a1   : > { %v2388_v6 = vpop.eup %2387 }
 0x4a2   : > { %v1248_v7 = vsel %vm1019_vm3, %v2388_v6, 0.0 }
 0x4a3   : > { %1249 = vadd.xlane.f32.xlu1 %v1248_v7 }
 0x530   : > { %v1250_v10 = vpop.xlane.xlu1 %1249 }
 0x531   : > { %2389 = vrcp.f32 %v1250_v10 }
 0x53b   : > { %v2390_v11 = vpop.eup %2389 }
 0x53c   : > { %v1252_v13 = vmul.f32 %v2390_v11, %v2388_v6 }
 0x53e   : > { %v1253_v14 = vpack.c.bf16 %v1252_v13, %v1252_v13 }
 0x540   : > { %2235 = vmatmul.mubr.msk.bf16.vlgmr.msra.gmra.mrb[24].mxu1 %vm1019_vm3, %v1253_v14 }
 0x541   : > { %2245 = vmatpush3.bf16.msra.mxu1 %v1355_v15  ;;  %2246 = vmatprep.mubr.msk.bf16.mxu1 %vm2480_vm0, %v2479_v1 }
 0x542   : > { %2258 = vmatprep.subr.bf16.mxu1 %v2479_v1 }
 0x548   : > { %2247 = vmatmul.mubr.msk.bf16.vlgmr.msra.gmra.mrb[28].mxu1 %vm1019_vm3, %v1126_v16 }
 0x549   : > { %2260 = vmatprep.mubr.msk.bf16.mxu1 %vm2480_vm0, %v2479_v1 }
 0x54a   : > { %2259 = vmatpush3.bf16.xpose.msra.mxu1 %v1469_v18 }
 0x54b   : > { %2270 = vmatprep.subr.bf16.mxu1 %v2479_v1 }
 0x613   : > { %v1296_v19 = vpop.f32.mrb[24].mxu1 }
 0x614   : > { %v1302_v21 = vpack.c.bf16 %v1296_v19, %v1296_v19  ;;  %v2236_v23 = vpop.f32.mrb[25].mxu1 }
 0x615   : > { %v1299_v24 = vpop.f32.mrb[26].mxu1 }
 0x616   : > { %v2237_v25 = vpop.f32.mrb[27].mxu1  ;;  %2241 = vmatmul.mubr.msk.bf16.vlgmr.msra.gmra.mrb[28].mxu0 %vm1019_vm3, %v1302_v21 }
 0x617   : > { %2251 = vmatpush3.bf16.msra.mxu0 %v2379_v20  ;;  %2254 = vmatprep.mubr.msk.bf16.mxu0 %vm2480_vm0, %v2479_v1 }
 0x618   : > { %2252 = vmatprep.subr.bf16.mxu0 %v2479_v1 }
 0x61b   : > { %2253 = vmatpush3.bf16.msra.mxu0 %v2380_v26  ;;  %v1391_v27 = vpop.f32.mrb[28].mxu1 }
 0x61c   : > { %v2248_v29 = vpop.f32.mrb[29].mxu1  ;;  %2264 = vmatprep.subr.bf16.mxu0 %v2479_v1 }
 0x61d   : > { %v1394_v30 = vpop.f32.mrb[30].mxu1 }
 0x61e   : > { %v2249_v31 = vpop.f32.mrb[31].mxu1  ;;  %2255 = vmatmul.mubr.msk.bf16.vlgmr.msra.gmra.mrb[32].mxu0 %vm417_vm1, %v2704_v22  ;;  %v2067_v30 = vld [vmem:[%s2944_s8 + $0xc] sm:$0xf] }
 0x61f   : > { %2265 = vmatpush3.bf16.msra.mxu0 %v1529_v32  ;;  %2266 = vmatprep.mubr.msk.bf16.mxu0 %vm2480_vm0, %v2479_v1  ;;  %v1802_v31 = vsel %vm1082_vm4, %v2067_v30, 0 }
 0x620   : > { %2276 = vmatprep.subr.bf16.mxu0 %v2479_v1 }
 0x6e9   : > { %v1345_v33 = vpop.f32.mrb[28].mxu0 }
 0x6ea   : > { %v2829_v34 = vadd.f32 %v1391_v27, %v1345_v33  ;;  %v2242_v35 = vpop.f32.mrb[29].mxu0 }
 0x6eb   : > { %v1348_v36 = vpop.f32.mrb[30].mxu0 }
 0x6ec   : > { %v2243_v37 = vpop.f32.mrb[31].mxu0 }
 0x6f1   : > { %v1456_v39 = vpop.f32.mrb[32].mxu0 }
 0x6f2   : > { %v1457_v40 = vadd.f32 %v2048_v38, %v1456_v39  ;;  %v2256_v41 = vpop.f32.mrb[33].mxu0 }
 0x6f3   : > { %v1459_v42 = vpop.f32.mrb[34].mxu0 }
 0x6f4   : > { %v1462_v43 = vpack.c.bf16 %v1457_v40, %v1457_v40  ;;  %v2257_v44 = vpop.f32.mrb[35].mxu0  ;;  %v2069_v42 = vld [vmem:[%s2945_s9] ss:$0 sm:$0xff] }
 0x6f6   : > { %2261 = vmatmul.mubr.msk.bf16.vlgmr.msra.gmra.mrb[32].mxu1 %vm1019_vm3, %v1462_v43 }
 0x6f7   : > { %2272 = vmatprep.mubr.msk.bf16.mxu1 %vm2480_vm0, %v2479_v1  ;;  %2271 = vmatpush3.bf16.msra.mxu1 %v1578_v56 }
 0x6f8   : > { %2284 = vmatprep.subr.bf16.mxu1 %v2479_v1 }
 0x7c9   : > { %v1505_v45 = vpop.f32.mrb[32].mxu1 }
 0x7ca   : > { %v2262_v46 = vpop.f32.mrb[33].mxu1  ;;  %v1511_v47 = vsel %vm1019_vm3, %v1505_v45, -inf }
 0x7cb   : > { %1512 = vmax.xlane.f32.xlu0 %v1511_v47  ;;  %v1508_v48 = vpop.f32.mrb[34].mxu1 }
 0x7cc   : > { %v2263_v49 = vpop.f32.mrb[35].mxu1 }
 0x858   : > { %v1513_v50 = vpop.xlane.xlu0 %1512 }
 0x859   : > { %v1514_v51 = vsub.f32 %v1505_v45, %v1513_v50 }
 0x85b   : > { %v1515_v52 = vmul.f32 1.442695, %v1514_v51 }
 0x85d   : > { %2391 = vpow2.f32 %v1515_v52 }
 0x867   : > { %v2392_v53 = vpop.eup %2391 }
 0x868   : > { %v1517_v54 = vsel %vm1019_vm3, %v2392_v53, 0.0 }
 0x869   : > { %1518 = vadd.xlane.f32.xlu1 %v1517_v54 }
 0x8f6   : > { %v1519_v57 = vpop.xlane.xlu1 %1518 }
 0x8f7   : > { %2393 = vrcp.f32 %v1519_v57 }
 0x901   : > { %v2394_v58 = vpop.eup %2393 }
 0x902   : > { %v1521_v59 = vmul.f32 %v2394_v58, %v2392_v53 }
 0x904   : > { %v1522_v61 = vpack.c.bf16 %v1521_v59, %v1521_v59 }
 0x906   : > { %2267 = vmatmul.mubr.msk.bf16.vlgmr.msra.gmra.mrb[36].mxu0 %vm1019_vm3, %v1522_v61 }
 0x907   : > { %2277 = vmatpush3.bf16.msra.mxu0 %v2381_v60  ;;  %2280 = vmatprep.mubr.msk.bf16.mxu0 %vm2480_vm0, %v2479_v1 }
 0x908   : > { %2278 = vmatprep.subr.bf16.mxu0 %v2479_v1 }
 0x90b   : > { %2279 = vmatpush3.bf16.msra.mxu0 %v2382_v62 }
 0x90c   : > { %2290 = vmatprep.subr.bf16.mxu0 %v2479_v1 }
 0x90e   : > { %2281 = vmatmul.mubr.msk.bf16.vlgmr.msra.gmra.mrb[40].mxu0 %vm417_vm1, %v2704_v22  ;;  %v2061_v22 = vld [vmem:[%s2939_s3 + $0x3] ss:$0 sm:$0xff] }
 0x90f   : > { %2291 = vmatpush3.bf16.msra.mxu0 %v1753_v0  ;;  %2292 = vmatprep.mubr.msk.bf16.mxu0 %vm2480_vm0, %v2479_v1 }
 0x9d9   : > { %v1565_v2 = vpop.f32.mrb[36].mxu0 }
 0x9da   : > { %v1571_v4 = vpack.c.bf16 %v1565_v2, %v1565_v2  ;;  %v2268_v5 = vpop.f32.mrb[37].mxu0 }
 0x9db   : > { %v1568_v6 = vpop.f32.mrb[38].mxu0 }
 0x9dc   : > { %v2269_v7 = vpop.f32.mrb[39].mxu0  ;;  %2273 = vmatmul.mubr.msk.bf16.vlgmr.msra.gmra.mrb[36].mxu1 %vm1019_vm3, %v1571_v4 }
 0x9dd   : > { %2285 = vmatpush3.bf16.xpose.msra.mxu1 %v1693_v8  ;;  %2286 = vmatprep.mubr.msk.bf16.mxu1 %vm2480_vm0, %v2479_v1 }
 0x9de   : > { %2296 = vmatprep.subr.bf16.mxu1 %v2479_v1 }
 0x9e1   : > { %v1680_v9 = vpop.f32.mrb[40].mxu0 }
 0x9e2   : > { %v1681_v10 = vadd.f32 %v2061_v22, %v1680_v9  ;;  %v2282_v11 = vpop.f32.mrb[41].mxu0 }
 0x9e3   : > { %v1683_v12 = vpop.f32.mrb[42].mxu0 }
 0x9e4   : > { %v1686_v13 = vpack.c.bf16 %v1681_v10, %v1681_v10  ;;  %v2283_v14 = vpop.f32.mrb[43].mxu0 }
 0x9e6   : > { %2287 = vmatmul.mubr.msk.bf16.vlgmr.msra.gmra.mrb[40].mxu1 %vm1019_vm3, %v1686_v13 }
 0x9e7   : > { %2298 = vmatprep.mubr.msk.bf16.mxu1 %vm2480_vm0, %v2479_v1  ;;  %2297 = vmatpush3.bf16.msra.mxu1 %v1802_v31 }
 0xaaf   : > { %v1614_v15 = vpop.f32.mrb[36].mxu1 }
 0xab0   : > { %v1620_v16 = vadd.f32 %v1614_v15, %v2829_v34  ;;  %v2274_v17 = vpop.f32.mrb[37].mxu1 }
 0xab1   : > { %v1617_v18 = vpop.f32.mrb[38].mxu1 }
 0xab2   : > { %v2275_v19 = vpop.f32.mrb[39].mxu1 }
 0xab9   : > { %v1729_v20 = vpop.f32.mrb[40].mxu1 }
 0xaba   : > { %v2288_v21 = vpop.f32.mrb[41].mxu1  ;;  %v1735_v23 = vsel %vm1019_vm3, %v1729_v20, -inf }
 0xabb   : > { %1736 = vmax.xlane.f32.xlu0 %v1735_v23  ;;  %v1732_v24 = vpop.f32.mrb[42].mxu1 }
 0xabc   : > { %v2289_v25 = vpop.f32.mrb[43].mxu1 }
 0xb48   : > { %v1737_v26 = vpop.xlane.xlu0 %1736 }
 0xb49   : > { %v1738_v27 = vsub.f32 %v1729_v20, %v1737_v26 }
 0xb4b   : > { %v1739_v28 = vmul.f32 1.442695, %v1738_v27 }
 0xb4d   : > { %2395 = vpow2.f32 %v1739_v28 }
 0xb57   : > { %v2396_v29 = vpop.eup %2395 }
 0xb58   : > { %v1741_v1 = vsel %vm1019_vm3, %v2396_v29, 0.0 }
 0xb59   : > { %1742 = vadd.xlane.f32.xlu1 %v1741_v1 }
 0xbe6   : > { %v1743_v32 = vpop.xlane.xlu1 %1742 }
 0xbe7   : > { %2397 = vrcp.f32 %v1743_v32 }
 0xbf1   : > { %v2398_v33 = vpop.eup %2397 }
 0xbf2   : > { %v1745_v34 = vmul.f32 %v2398_v33, %v2396_v29 }
 0xbf4   : > { %v1746_v35 = vpack.c.bf16 %v1745_v34, %v1745_v34 }
 0xbf6   : > { %2293 = vmatmul.mubr.msk.bf16.vlgmr.msra.gmra.mrb[44].mxu0 %vm1019_vm3, %v1746_v35 }
 0xcc9   : > { %v1789_v36 = vpop.f32.mrb[44].mxu0 }
 0xcca   : > { %v1795_v37 = vpack.c.bf16 %v1789_v36, %v1789_v36  ;;  %v2294_v38 = vpop.f32.mrb[45].mxu0 }
 0xccb   : > { %v1792_v39 = vpop.f32.mrb[46].mxu0 }
 0xccc   : > { %v2295_v40 = vpop.f32.mrb[47].mxu0  ;;  %2299 = vmatmul.mubr.msk.bf16.vlgmr.msra.gmra.mrb[44].mxu1 %vm1019_vm3, %v1795_v37 }
 0xd9f   : > { %v1838_v41 = vpop.f32.mrb[44].mxu1 }
 0xda0   : > { %v1844_v43 = vadd.f32 %v1838_v41, %v1620_v16  ;;  %v2300_v44 = vpop.f32.mrb[45].mxu1 }
 0xda1   : > { %v1841_v45 = vpop.f32.mrb[46].mxu1 }
 0xda2   : > { %v1852_v46 = vadd.f32 %v2069_v42, %v1844_v43  ;;  %v2301_v47 = vpop.f32.mrb[47].mxu1 }
 0xda4   : > { %1853 = vst.msk [vmem:[%s377_s20] sm:$0xff] %vm417_vm1, %v1852_v46 }
 0xda5   : > { %2412 = shalt.err (!%p2409_p5)
}
 0xda6   : > { %s2413_s11 = scalar_lea.hbm %s2888_s30, 128  ;;  %s2417_s27 = scalar_lea.hbm %s2946_s10, 256 }
 0xda7   : > { %p2414_p6 = scmp.ne.s32.totalorder %s2888_s30, %s2413_s11  ;;  %p2418_p10 = scmp.lt.u32.totalorder %s2888_s30, %s2946_s10 }
 0xda8   : > { %p2419_p11 = scmp.lt.u32.totalorder %s2417_s27, %s2413_s11  ;;  %p2421_p13 = scmp.lt.u32.totalorder %s2413_s11, %s2888_s30 }
 0xda9   : > { %p2415_p7 = pnand %p2414_p6, %p2577_p4 }
 0xdaa   : > { %p2420_p12 = por %p2419_p11, %p2418_p10 }
 0xdab   : > { %p2416_p9 = pneg %p2415_p7 }
 0xdac   : > { %p2422_p0 = por %p2421_p13, %p2420_p12 }
 0xdae   : > { %p2423_p1 = pnand %p2422_p0, %p2416_p9 }
 0xdb0   : > { %2426 = shalt.err (!%p2423_p1)
}
 0xdb1   : > { %2302 = dma.vmem_to_hbm [thread:$0]  (%p2577_p4), %s2890_s24, 128, %s2888_s30, %s1855_s16  }
 0xdb2 PF: > { %p2308_p2 = scmp.ge.s32.totalorder %s2477_s18, 2  ;;  %s1881_s0 = sand.u32 1, %s2457_s13  }
 0xdb3   : > { %s1882_s19 = scalar_lea.sflag [#allocation5], %s1881_s0 }
 0xdb4   : > { %p2305_p3 = pnand %p2308_p2, %p2584_p8 }
 0xdb6   : > { %2452 = dma.done.wait (!%p2305_p3), %s1882_s19, 128  }
 0xdb7   : > { %2454 = vsyncadd (!%p2305_p3), %s1882_s19, 4294967168  ;;  %s23_s18 = sadd.s32 1, %s2477_s18   ;;  %s2951_s13 = smov %s2461_s14 }
 0xdb8   : > { %p20_p5 = scmp.ge.s32.totalorder %s23_s18, 4   ;;  %s2952_s14 = smov %s2465_s15 }
 0xdb9   : > { %s2953_s15 = smov %s2590_s26  ;;  %s2954_s16 = smov %s2473_s17 }
 0xdba   : > { %s2955_s17 = smov %s2957_s21  ;;  %22 = sbr.rel (!%p20_p5) target bundleno = 6 (0x6), region = 137 }
 0xdc1   :  { %1887 = vsyncpa [#allocation5], 1 }
 0xdc2   :  { %1889 = vsyncpa [#allocation5 + $0x1], 1 }

</bundles_post_ra>
